<compile_context>
chip_gen: v7x
topology: tpu7x:2x2x1
jax: 0.10.0
libtpu: 0.0.40
codegen_flags: <defaults>
</compile_context>

<pallas_src>
import math
import functools

import jax
import jax.numpy as jnp
from jax.experimental import pallas as pl
from jax.experimental.pallas import tpu as pltpu


# ----------------------------- config (small, synthetic) -----------------------------
BATCH = 2
SEQ = 8
HIDDEN = 32
NUM_HEADS = 4
HEAD_DIM = HIDDEN // NUM_HEADS
INTERMEDIATE = 64
ADAPTER_DIM = 16
NUM_LAYERS = 2
LN_EPS = 1e-12
DTYPE = jnp.float32


# ----------------------------------- kernel ------------------------------------------
def bert_ada_encoder_kernel(
    x_ref,                                   # (B*S, H) input hidden states (resident)
    wq_ref, wk_ref, wv_ref, wao_ref,         # (1,H,H) each, pre-transposed [in,out]
    a1w1_ref, a1w2_ref,                      # (1,H,A), (1,A,H)
    wi_ref, wo_ref,                          # (1,H,I), (1,I,H)
    a2w1_ref, a2w2_ref,                      # (1,H,A), (1,A,H)
    vec_ref,                                 # (1,9,H)  packed biases / LN params
    bi_ref,                                  # (1,1,I)  intermediate bias
    out_ref,                                 # (B*S, H)
    h_ref,                                   # VMEM scratch: hidden state carried across layers
    *, batch, seq, num_heads, head_dim, eps,
):
    layer = pl.program_id(0)

    # Load the input once; afterwards the hidden state lives in VMEM scratch.
    @pl.when(layer == 0)
    def _():
        h_ref[...] = x_ref[...].astype(jnp.float32)

    x = h_ref[...]                            # (B*S, H)

    vecs = vec_ref[0]                         # (9, H): bq,bk,bv,bao,g1,b1,bo,g2,b2
    bq, bk, bv = vecs[0:1, :], vecs[1:2, :], vecs[2:3, :]
    bao = vecs[3:4, :]
    g1, b1 = vecs[4:5, :], vecs[5:6, :]
    bo = vecs[6:7, :]
    g2, b2 = vecs[7:8, :], vecs[8:9, :]
    bi = bi_ref[0]                            # (1, I)

    def layer_norm(v, g, b):
        mu = jnp.mean(v, axis=-1, keepdims=True)
        var = jnp.mean((v - mu) ** 2, axis=-1, keepdims=True)
        return (v - mu) * jax.lax.rsqrt(var + eps) * g + b

    def list_adapter(v, w1_ref, w2_ref):
        # AdapeterLayer('LiST'): (x @ W1^T) @ W2^T + x   (weights pre-transposed, no act)
        r = jnp.dot(v, w1_ref[0], preferred_element_type=jnp.float32)
        r = jnp.dot(r, w2_ref[0], preferred_element_type=jnp.float32)
        return r + v

    # ---------------- BertSelfAttention (all B*S rows in one matmul) ----------------
    q = jnp.dot(x, wq_ref[0], preferred_element_type=jnp.float32) + bq
    k = jnp.dot(x, wk_ref[0], preferred_element_type=jnp.float32) + bk
    v = jnp.dot(x, wv_ref[0], preferred_element_type=jnp.float32) + bv

    scale = 1.0 / math.sqrt(head_dim)
    wao = wao_ref[0]                          # (H, H) [in, out]
    att = jnp.zeros((batch * seq, wao.shape[1]), jnp.float32)
    for hh in range(num_heads):               # static unroll; batch handled by einsum
        lo = hh * head_dim
        qh = q[:, lo:lo + head_dim].reshape(batch, seq, head_dim)
        kh = k[:, lo:lo + head_dim].reshape(batch, seq, head_dim)
        vh = v[:, lo:lo + head_dim].reshape(batch, seq, head_dim)
        s = jnp.einsum("bqd,bkd->bqk", qh, kh,
                       preferred_element_type=jnp.float32) * scale
        s = s - jnp.max(s, axis=-1, keepdims=True)
        p = jnp.exp(s)
        p = p * pl.reciprocal(jnp.sum(p, axis=-1, keepdims=True), approx=True)
        ctx = jnp.einsum("bqk,bkd->bqd", p, vh,
                         preferred_element_type=jnp.float32)
        # Fold the head-concat into the attention-output dense: accumulate the
        # per-head partial product against the matching row-block of Wao.
        att = att + jnp.dot(ctx.reshape(batch * seq, head_dim),
                            wao[lo:lo + head_dim, :],
                            preferred_element_type=jnp.float32)
    att = att + bao

    # ---------------- BertAdaSelfOutput (adapter + dropout(id) + LayerNorm) ---------
    h1 = list_adapter(att, a1w1_ref, a1w2_ref)
    h1 = layer_norm(h1 + x, g1, b1)

    # ---------------- BertIntermediate (exact-erf GELU) -----------------------------
    inter = jnp.dot(h1, wi_ref[0], preferred_element_type=jnp.float32) + bi
    inter = 0.5 * inter * (1.0 + jax.lax.erf(inter * (1.0 / math.sqrt(2.0))))

    # ---------------- BertAdaOutput --------------------------------------------------
    o = jnp.dot(inter, wo_ref[0], preferred_element_type=jnp.float32) + bo
    o = list_adapter(o, a2w1_ref, a2w2_ref)
    o = layer_norm(o + h1, g2, b2)

    h_ref[...] = o                            # carry to the next layer (stays in VMEM)
    out_ref[...] = o.astype(out_ref.dtype)    # same block every step -> one HBM writeback


# ----------------------------------- wrapper ------------------------------------------
def make_encoder_call(B, S, H, L):
    kernel = functools.partial(
        bert_ada_encoder_kernel,
        batch=B, seq=S, num_heads=NUM_HEADS, head_dim=HEAD_DIM, eps=LN_EPS,
    )

    def per_layer_spec(shape):
        # One layer's slice of the stacked weight per grid step (pipelined prefetch).
        return pl.BlockSpec((1,) + tuple(shape[1:]), lambda l: (l, 0, 0))

    def resident_spec(shape):
        # Same block every step -> fetched/written once, resident in VMEM.
        return pl.BlockSpec(tuple(shape), lambda l: (0, 0))

    @jax.jit
    def call(x, packed):
        x2 = x.reshape(B * S, H)              # flatten batch*seq for full sublane use
        in_specs = [resident_spec((B * S, H))] + [per_layer_spec(p.shape) for p in packed]
        out = pl.pallas_call(
            kernel,
            out_shape=jax.ShapeDtypeStruct((B * S, H), x.dtype),
            grid=(L,),
            in_specs=in_specs,
            out_specs=resident_spec((B * S, H)),
            scratch_shapes=[pltpu.VMEM((B * S, H), jnp.float32)],
            compiler_params=pltpu.CompilerParams(
                dimension_semantics=("arbitrary",),   # layers are strictly sequential
            ),
        )(x2, *packed)
        return out.reshape(B, S, H)

    return call


# ------------------------------ deterministic params ----------------------------------
def init_layer_params(key):
    """Per-layer params in PyTorch convention: W[out, in], biases shaped (1, dim)."""
    ks = jax.random.split(key, 12)
    n = lambda k, shape: (0.02 * jax.random.normal(k, shape)).astype(DTYPE)
    zeros = lambda shape: jnp.zeros(shape, DTYPE)
    ones = lambda shape: jnp.ones(shape, DTYPE)
    return [
        n(ks[0], (HIDDEN, HIDDEN)), zeros((1, HIDDEN)),              # 0 Wq,  1 bq
        n(ks[1], (HIDDEN, HIDDEN)), zeros((1, HIDDEN)),              # 2 Wk,  3 bk
        n(ks[2], (HIDDEN, HIDDEN)), zeros((1, HIDDEN)),              # 4 Wv,  5 bv
        n(ks[3], (HIDDEN, HIDDEN)), zeros((1, HIDDEN)),              # 6 Wao, 7 bao
        n(ks[4], (ADAPTER_DIM, HIDDEN)),                             # 8  adapter1 proj_1
        n(ks[5], (HIDDEN, ADAPTER_DIM)),                             # 9  adapter1 proj_2
        ones((1, HIDDEN)), zeros((1, HIDDEN)),                       # 10 g1, 11 b1
        n(ks[6], (INTERMEDIATE, HIDDEN)), zeros((1, INTERMEDIATE)),  # 12 Wi, 13 bi
        n(ks[7], (HIDDEN, INTERMEDIATE)), zeros((1, HIDDEN)),        # 14 Wo, 15 bo
        n(ks[8], (ADAPTER_DIM, HIDDEN)),                             # 16 adapter2 proj_1
        n(ks[9], (HIDDEN, ADAPTER_DIM)),                             # 17 adapter2 proj_2
        ones((1, HIDDEN)), zeros((1, HIDDEN)),                       # 18 g2, 19 b2
    ]


def pack_encoder_params(all_params):
    """Stack per-layer params along a leading layer axis, pre-transpose weights to
    [in, out], and pack the 9 hidden-sized bias / LayerNorm vectors into one slab."""
    stack_t = lambda idx: jnp.stack([p[idx].T for p in all_params], axis=0)
    stack = lambda idx: jnp.stack([p[idx] for p in all_params], axis=0)

    vec_ids = (1, 3, 5, 7, 10, 11, 15, 18, 19)   # bq, bk, bv, bao, g1, b1, bo, g2, b2
    vecs = jnp.stack(
        [jnp.concatenate([p[i] for i in vec_ids], axis=0) for p in all_params], axis=0)

    return [
        stack_t(0), stack_t(2), stack_t(4), stack_t(6),   # Wq, Wk, Wv, Wao   (L,H,H)
        stack_t(8), stack_t(9),                           # adapter1 W1, W2   (L,H,A),(L,A,H)
        stack_t(12), stack_t(14),                         # Wi, Wo            (L,H,I),(L,I,H)
        stack_t(16), stack_t(17),                         # adapter2 W1, W2
        vecs,                                             # packed vectors    (L,9,H)
        stack(13),                                        # bi                (L,1,I)
    ]


# --------------------------------- pure-JAX reference ---------------------------------
def ref_layer(x, p):
    (wq, bq, wk, bk, wv, bv, wao, bao, a1w1, a1w2, g1, b1,
     wi, bi, wo, bo, a2w1, a2w2, g2, b2) = p

    def lin(v, w, b=None):
        y = v @ w.T
        return y + b if b is not None else y

    def ln(v, g, b):
        mu = jnp.mean(v, -1, keepdims=True)
        var = jnp.mean((v - mu) ** 2, -1, keepdims=True)
        return (v - mu) / jnp.sqrt(var + LN_EPS) * g + b

    B, S, H = x.shape
    q = lin(x, wq, bq).reshape(B, S, NUM_HEADS, HEAD_DIM).transpose(0, 2, 1, 3)
    k = lin(x, wk, bk).reshape(B, S, NUM_HEADS, HEAD_DIM).transpose(0, 2, 1, 3)
    v = lin(x, wv, bv).reshape(B, S, NUM_HEADS, HEAD_DIM).transpose(0, 2, 1, 3)
    s = jnp.einsum("bhqd,bhkd->bhqk", q, k) / math.sqrt(HEAD_DIM)
    pattn = jax.nn.softmax(s, axis=-1)
    ctx = jnp.einsum("bhqk,bhkd->bhqd", pattn, v).transpose(0, 2, 1, 3).reshape(B, S, H)

    h = lin(ctx, wao, bao)
    h = (h @ a1w1.T) @ a1w2.T + h
    h = ln(h + x, g1, b1)

    inter = lin(h, wi, bi)
    inter = 0.5 * inter * (1.0 + jax.lax.erf(inter / math.sqrt(2.0)))

    o = lin(inter, wo, bo)
    o = (o @ a2w1.T) @ a2w2.T + o
    o = ln(o + h, g2, b2)
    return o


# --------------------------------------- main -----------------------------------------
if __name__ == "__main__":
    root = jax.random.PRNGKey(0)
    kx, kp = jax.random.split(root)
    x = jax.random.normal(kx, (BATCH, SEQ, HIDDEN), dtype=DTYPE)

    layer_keys = jax.random.split(kp, NUM_LAYERS)
    all_params = [init_layer_params(k) for k in layer_keys]
    packed = pack_encoder_params(all_params)

    encoder = make_encoder_call(BATCH, SEQ, HIDDEN, NUM_LAYERS)
    out = jax.block_until_ready(encoder(x, packed))

    # sanity check vs pure-JAX reference (tolerance slightly relaxed because the
    # softmax denominator uses the EUP approximate reciprocal)
    ref = x
    for p in all_params:
        ref = ref_layer(ref, p)
    assert jnp.allclose(out, ref, atol=2e-3, rtol=2e-3), "mismatch vs reference"

    print("KERNEL_OK")
</pallas_src>

<mosaic_0001>
module attributes {stable_mosaic.version = 11 : i64} {
  func.func @bert_ada_encoder_kernel(%arg0: i32, %arg1: memref<16x32xf32, #tpu.memory_space<vmem>>, %arg2: memref<1x32x32xf32, #tpu.memory_space<vmem>>, %arg3: memref<1x32x32xf32, #tpu.memory_space<vmem>>, %arg4: memref<1x32x32xf32, #tpu.memory_space<vmem>>, %arg5: memref<1x32x32xf32, #tpu.memory_space<vmem>>, %arg6: memref<1x32x16xf32, #tpu.memory_space<vmem>>, %arg7: memref<1x16x32xf32, #tpu.memory_space<vmem>>, %arg8: memref<1x32x64xf32, #tpu.memory_space<vmem>>, %arg9: memref<1x64x32xf32, #tpu.memory_space<vmem>>, %arg10: memref<1x32x16xf32, #tpu.memory_space<vmem>>, %arg11: memref<1x16x32xf32, #tpu.memory_space<vmem>>, %arg12: memref<1x9x32xf32, #tpu.memory_space<vmem>>, %arg13: memref<1x1x64xf32, #tpu.memory_space<vmem>>, %arg14: memref<16x32xf32, #tpu.memory_space<vmem>>, %arg15: memref<16x32xf32, #tpu.memory_space<vmem>>) attributes {dimension_semantics = [#tpu.dimension_semantics<arbitrary>], iteration_bounds = array<i64: 2>, scalar_prefetch = 0 : i64, scratch_operands = 1 : i64, tpu.core_type = #tpu.core_type<tc>, window_params = [{pipeline_mode = #tpu.pipeline_mode<synchronous>, transform_indices = @transform_0, window_bounds = array<i64: 16, 32>}, {transform_indices = @transform_1, window_bounds = array<i64: 1, 32, 32>}, {transform_indices = @transform_2, window_bounds = array<i64: 1, 32, 32>}, {transform_indices = @transform_3, window_bounds = array<i64: 1, 32, 32>}, {transform_indices = @transform_4, window_bounds = array<i64: 1, 32, 32>}, {transform_indices = @transform_5, window_bounds = array<i64: 1, 32, 16>}, {transform_indices = @transform_6, window_bounds = array<i64: 1, 16, 32>}, {transform_indices = @transform_7, window_bounds = array<i64: 1, 32, 64>}, {transform_indices = @transform_8, window_bounds = array<i64: 1, 64, 32>}, {transform_indices = @transform_9, window_bounds = array<i64: 1, 32, 16>}, {transform_indices = @transform_10, window_bounds = array<i64: 1, 16, 32>}, {transform_indices = @transform_11, window_bounds = array<i64: 1, 9, 32>}, {transform_indices = @transform_12, window_bounds = array<i64: 1, 1, 64>}, {pipeline_mode = #tpu.pipeline_mode<synchronous>, transform_indices = @transform_13, window_bounds = array<i64: 16, 32>}]} {
    %c0_i32 = arith.constant 0 : i32
    %0 = arith.cmpi eq, %arg0, %c0_i32 : i32
    %1 = arith.extui %0 : i1 to i32
    %c0_i32_0 = arith.constant 0 : i32
    %2 = arith.cmpi ne, %1, %c0_i32_0 : i32
    scf.if %2 {
      %c0_88 = arith.constant 0 : index
      %c0_89 = arith.constant 0 : index
      %213 = vector.load %arg1[%c0_88, %c0_89] : memref<16x32xf32, #tpu.memory_space<vmem>>, vector<16x32xf32>
      %c0_90 = arith.constant 0 : index
      %c0_91 = arith.constant 0 : index
      %214 = vector.load %arg15[%c0_90, %c0_91] : memref<16x32xf32, #tpu.memory_space<vmem>>, vector<16x32xf32>
      tpu.vector_store %arg15[%c0_90, %c0_91], %213 {strides = array<i32>} : memref<16x32xf32, #tpu.memory_space<vmem>>, vector<16x32xf32>,
    } else {
    }
    %c0 = arith.constant 0 : index
    %c0_1 = arith.constant 0 : index
    %3 = vector.load %arg15[%c0, %c0_1] : memref<16x32xf32, #tpu.memory_space<vmem>>, vector<16x32xf32>
    %c0_2 = arith.constant 0 : index
    %c0_3 = arith.constant 0 : index
    %c0_4 = arith.constant 0 : index
    %4 = vector.load %arg12[%c0_2, %c0_3, %c0_4] : memref<1x9x32xf32, #tpu.memory_space<vmem>>, vector<1x9x32xf32>
    %5 = vector.shape_cast %4 : vector<1x9x32xf32> to vector<9x32xf32>
    %6 = vector.extract_strided_slice %5 {offsets = [0, 0], sizes = [1, 32], strides = [1, 1]} : vector<9x32xf32> to vector<1x32xf32>
    %7 = vector.extract_strided_slice %5 {offsets = [1, 0], sizes = [1, 32], strides = [1, 1]} : vector<9x32xf32> to vector<1x32xf32>
    %8 = vector.extract_strided_slice %5 {offsets = [2, 0], sizes = [1, 32], strides = [1, 1]} : vector<9x32xf32> to vector<1x32xf32>
    %9 = vector.extract_strided_slice %5 {offsets = [3, 0], sizes = [1, 32], strides = [1, 1]} : vector<9x32xf32> to vector<1x32xf32>
    %10 = vector.extract_strided_slice %5 {offsets = [4, 0], sizes = [1, 32], strides = [1, 1]} : vector<9x32xf32> to vector<1x32xf32>
    %11 = vector.extract_strided_slice %5 {offsets = [5, 0], sizes = [1, 32], strides = [1, 1]} : vector<9x32xf32> to vector<1x32xf32>
    %12 = vector.extract_strided_slice %5 {offsets = [6, 0], sizes = [1, 32], strides = [1, 1]} : vector<9x32xf32> to vector<1x32xf32>
    %13 = vector.extract_strided_slice %5 {offsets = [7, 0], sizes = [1, 32], strides = [1, 1]} : vector<9x32xf32> to vector<1x32xf32>
    %14 = vector.extract_strided_slice %5 {offsets = [8, 0], sizes = [1, 32], strides = [1, 1]} : vector<9x32xf32> to vector<1x32xf32>
    %c0_5 = arith.constant 0 : index
    %c0_6 = arith.constant 0 : index
    %c0_7 = arith.constant 0 : index
    %15 = vector.load %arg13[%c0_5, %c0_6, %c0_7] : memref<1x1x64xf32, #tpu.memory_space<vmem>>, vector<1x1x64xf32>
    %16 = vector.shape_cast %15 : vector<1x1x64xf32> to vector<1x64xf32>
    %c0_8 = arith.constant 0 : index
    %c0_9 = arith.constant 0 : index
    %c0_10 = arith.constant 0 : index
    %17 = vector.load %arg2[%c0_8, %c0_9, %c0_10] : memref<1x32x32xf32, #tpu.memory_space<vmem>>, vector<1x32x32xf32>
    %18 = vector.shape_cast %17 : vector<1x32x32xf32> to vector<32x32xf32>
    %cst = arith.constant dense<0.000000e+00> : vector<16x32xf32>
    %19 = tpu.matmul %3, %18, %cst {dimension_numbers = #tpu.dot_dimension_numbers<[1], [0], [0], [1], [0, 0, 1, 1], [], []>} : vector<16x32xf32>, vector<32x32xf32>, vector<16x32xf32> -> vector<16x32xf32>
    %20 = vector.broadcast %6 : vector<1x32xf32> to vector<16x32xf32>
    %21 = arith.addf %19, %20 : vector<16x32xf32>
    %c0_11 = arith.constant 0 : index
    %c0_12 = arith.constant 0 : index
    %c0_13 = arith.constant 0 : index
    %22 = vector.load %arg3[%c0_11, %c0_12, %c0_13] : memref<1x32x32xf32, #tpu.memory_space<vmem>>, vector<1x32x32xf32>
    %23 = vector.shape_cast %22 : vector<1x32x32xf32> to vector<32x32xf32>
    %cst_14 = arith.constant dense<0.000000e+00> : vector<16x32xf32>
    %24 = tpu.matmul %3, %23, %cst_14 {dimension_numbers = #tpu.dot_dimension_numbers<[1], [0], [0], [1], [0, 0, 1, 1], [], []>} : vector<16x32xf32>, vector<32x32xf32>, vector<16x32xf32> -> vector<16x32xf32>
    %25 = vector.broadcast %7 : vector<1x32xf32> to vector<16x32xf32>
    %26 = arith.addf %24, %25 : vector<16x32xf32>
    %c0_15 = arith.constant 0 : index
    %c0_16 = arith.constant 0 : index
    %c0_17 = arith.constant 0 : index
    %27 = vector.load %arg4[%c0_15, %c0_16, %c0_17] : memref<1x32x32xf32, #tpu.memory_space<vmem>>, vector<1x32x32xf32>
    %28 = vector.shape_cast %27 : vector<1x32x32xf32> to vector<32x32xf32>
    %cst_18 = arith.constant dense<0.000000e+00> : vector<16x32xf32>
    %29 = tpu.matmul %3, %28, %cst_18 {dimension_numbers = #tpu.dot_dimension_numbers<[1], [0], [0], [1], [0, 0, 1, 1], [], []>} : vector<16x32xf32>, vector<32x32xf32>, vector<16x32xf32> -> vector<16x32xf32>
    %30 = vector.broadcast %8 : vector<1x32xf32> to vector<16x32xf32>
    %31 = arith.addf %29, %30 : vector<16x32xf32>
    %c0_19 = arith.constant 0 : index
    %c0_20 = arith.constant 0 : index
    %c0_21 = arith.constant 0 : index
    %32 = vector.load %arg5[%c0_19, %c0_20, %c0_21] : memref<1x32x32xf32, #tpu.memory_space<vmem>>, vector<1x32x32xf32>
    %33 = vector.shape_cast %32 : vector<1x32x32xf32> to vector<32x32xf32>
    %cst_22 = arith.constant 0.000000e+00 : f32
    %34 = vector.broadcast %cst_22 : f32 to vector<16x32xf32>
    %35 = vector.extract_strided_slice %21 {offsets = [0, 0], sizes = [16, 8], strides = [1, 1]} : vector<16x32xf32> to vector<16x8xf32>
    %36 = vector.shape_cast %35 : vector<16x8xf32> to vector<2x8x8xf32>
    %37 = vector.extract_strided_slice %26 {offsets = [0, 0], sizes = [16, 8], strides = [1, 1]} : vector<16x32xf32> to vector<16x8xf32>
    %38 = vector.shape_cast %37 : vector<16x8xf32> to vector<2x8x8xf32>
    %39 = vector.extract_strided_slice %31 {offsets = [0, 0], sizes = [16, 8], strides = [1, 1]} : vector<16x32xf32> to vector<16x8xf32>
    %40 = vector.shape_cast %39 : vector<16x8xf32> to vector<2x8x8xf32>
    "tpu.trace_start"() <{level = 10 : i32, message = "bqd,bkd->bqk"}> : () -> ()
    %cst_23 = arith.constant dense<0.000000e+00> : vector<2x8x8xf32>
    %41 = tpu.matmul %36, %38, %cst_23 {dimension_numbers = #tpu.dot_dimension_numbers<[2], [2], [1], [1], [0, 0, 0, 1, 1, 1], [0], [0]>} : vector<2x8x8xf32>, vector<2x8x8xf32>, vector<2x8x8xf32> -> vector<2x8x8xf32>
    "tpu.trace_stop"() : () -> ()
    %cst_24 = arith.constant 0.353553385 : f32
    %42 = vector.broadcast %cst_24 : f32 to vector<2x8x8xf32>
    %43 = arith.mulf %41, %42 : vector<2x8x8xf32>
    %cst_25 = arith.constant dense<0xFF800000> : vector<2x8xf32>
    %44 = vector.multi_reduction <maximumf>, %43, %cst_25 [2] : vector<2x8x8xf32> to vector<2x8xf32>
    %45 = vector.shape_cast %44 : vector<2x8xf32> to vector<2x8x1xf32>
    %46 = vector.broadcast %45 : vector<2x8x1xf32> to vector<2x8x8xf32>
    %47 = arith.subf %43, %46 : vector<2x8x8xf32>
    %48 = math.exp %47 : vector<2x8x8xf32>
    %cst_26 = arith.constant dense<0.000000e+00> : vector<2x8xf32>
    %49 = vector.multi_reduction <add>, %48, %cst_26 [2] : vector<2x8x8xf32> to vector<2x8xf32>
    %50 = vector.shape_cast %49 : vector<2x8xf32> to vector<2x8x1xf32>
    %51 = tpu.reciprocal %50 {approx = true} : vector<2x8x1xf32> -> vector<2x8x1xf32>
    %52 = vector.broadcast %51 : vector<2x8x1xf32> to vector<2x8x8xf32>
    %53 = arith.mulf %48, %52 : vector<2x8x8xf32>
    "tpu.trace_start"() <{level = 10 : i32, message = "bqk,bkd->bqd"}> : () -> ()
    %cst_27 = arith.constant dense<0.000000e+00> : vector<2x8x8xf32>
    %54 = tpu.matmul %53, %40, %cst_27 {dimension_numbers = #tpu.dot_dimension_numbers<[2], [1], [1], [2], [0, 0, 0, 1, 1, 2], [0], [0]>} : vector<2x8x8xf32>, vector<2x8x8xf32>, vector<2x8x8xf32> -> vector<2x8x8xf32>
    "tpu.trace_stop"() : () -> ()
    %55 = vector.shape_cast %54 : vector<2x8x8xf32> to vector<16x8xf32>
    %56 = vector.extract_strided_slice %33 {offsets = [0, 0], sizes = [8, 32], strides = [1, 1]} : vector<32x32xf32> to vector<8x32xf32>
    %cst_28 = arith.constant dense<0.000000e+00> : vector<16x32xf32>
    %57 = tpu.matmul %55, %56, %cst_28 {dimension_numbers = #tpu.dot_dimension_numbers<[1], [0], [0], [1], [0, 0, 1, 1], [], []>} : vector<16x8xf32>, vector<8x32xf32>, vector<16x32xf32> -> vector<16x32xf32>
    %58 = arith.addf %34, %57 : vector<16x32xf32>
    %59 = vector.extract_strided_slice %21 {offsets = [0, 8], sizes = [16, 8], strides = [1, 1]} : vector<16x32xf32> to vector<16x8xf32>
    %60 = vector.shape_cast %59 : vector<16x8xf32> to vector<2x8x8xf32>
    %61 = vector.extract_strided_slice %26 {offsets = [0, 8], sizes = [16, 8], strides = [1, 1]} : vector<16x32xf32> to vector<16x8xf32>
    %62 = vector.shape_cast %61 : vector<16x8xf32> to vector<2x8x8xf32>
    %63 = vector.extract_strided_slice %31 {offsets = [0, 8], sizes = [16, 8], strides = [1, 1]} : vector<16x32xf32> to vector<16x8xf32>
    %64 = vector.shape_cast %63 : vector<16x8xf32> to vector<2x8x8xf32>
    "tpu.trace_start"() <{level = 10 : i32, message = "bqd,bkd->bqk"}> : () -> ()
    %cst_29 = arith.constant dense<0.000000e+00> : vector<2x8x8xf32>
    %65 = tpu.matmul %60, %62, %cst_29 {dimension_numbers = #tpu.dot_dimension_numbers<[2], [2], [1], [1], [0, 0, 0, 1, 1, 1], [0], [0]>} : vector<2x8x8xf32>, vector<2x8x8xf32>, vector<2x8x8xf32> -> vector<2x8x8xf32>
    "tpu.trace_stop"() : () -> ()
    %cst_30 = arith.constant 0.353553385 : f32
    %66 = vector.broadcast %cst_30 : f32 to vector<2x8x8xf32>
    %67 = arith.mulf %65, %66 : vector<2x8x8xf32>
    %cst_31 = arith.constant dense<0xFF800000> : vector<2x8xf32>
    %68 = vector.multi_reduction <maximumf>, %67, %cst_31 [2] : vector<2x8x8xf32> to vector<2x8xf32>
    %69 = vector.shape_cast %68 : vector<2x8xf32> to vector<2x8x1xf32>
    %70 = vector.broadcast %69 : vector<2x8x1xf32> to vector<2x8x8xf32>
    %71 = arith.subf %67, %70 : vector<2x8x8xf32>
    %72 = math.exp %71 : vector<2x8x8xf32>
    %cst_32 = arith.constant dense<0.000000e+00> : vector<2x8xf32>
    %73 = vector.multi_reduction <add>, %72, %cst_32 [2] : vector<2x8x8xf32> to vector<2x8xf32>
    %74 = vector.shape_cast %73 : vector<2x8xf32> to vector<2x8x1xf32>
    %75 = tpu.reciprocal %74 {approx = true} : vector<2x8x1xf32> -> vector<2x8x1xf32>
    %76 = vector.broadcast %75 : vector<2x8x1xf32> to vector<2x8x8xf32>
    %77 = arith.mulf %72, %76 : vector<2x8x8xf32>
    "tpu.trace_start"() <{level = 10 : i32, message = "bqk,bkd->bqd"}> : () -> ()
    %cst_33 = arith.constant dense<0.000000e+00> : vector<2x8x8xf32>
    %78 = tpu.matmul %77, %64, %cst_33 {dimension_numbers = #tpu.dot_dimension_numbers<[2], [1], [1], [2], [0, 0, 0, 1, 1, 2], [0], [0]>} : vector<2x8x8xf32>, vector<2x8x8xf32>, vector<2x8x8xf32> -> vector<2x8x8xf32>
    "tpu.trace_stop"() : () -> ()
    %79 = vector.shape_cast %78 : vector<2x8x8xf32> to vector<16x8xf32>
    %80 = vector.extract_strided_slice %33 {offsets = [8, 0], sizes = [8, 32], strides = [1, 1]} : vector<32x32xf32> to vector<8x32xf32>
    %cst_34 = arith.constant dense<0.000000e+00> : vector<16x32xf32>
    %81 = tpu.matmul %79, %80, %cst_34 {dimension_numbers = #tpu.dot_dimension_numbers<[1], [0], [0], [1], [0, 0, 1, 1], [], []>} : vector<16x8xf32>, vector<8x32xf32>, vector<16x32xf32> -> vector<16x32xf32>
    %82 = arith.addf %58, %81 : vector<16x32xf32>
    %83 = vector.extract_strided_slice %21 {offsets = [0, 16], sizes = [16, 8], strides = [1, 1]} : vector<16x32xf32> to vector<16x8xf32>
    %84 = vector.shape_cast %83 : vector<16x8xf32> to vector<2x8x8xf32>
    %85 = vector.extract_strided_slice %26 {offsets = [0, 16], sizes = [16, 8], strides = [1, 1]} : vector<16x32xf32> to vector<16x8xf32>
    %86 = vector.shape_cast %85 : vector<16x8xf32> to vector<2x8x8xf32>
    %87 = vector.extract_strided_slice %31 {offsets = [0, 16], sizes = [16, 8], strides = [1, 1]} : vector<16x32xf32> to vector<16x8xf32>
    %88 = vector.shape_cast %87 : vector<16x8xf32> to vector<2x8x8xf32>
    "tpu.trace_start"() <{level = 10 : i32, message = "bqd,bkd->bqk"}> : () -> ()
    %cst_35 = arith.constant dense<0.000000e+00> : vector<2x8x8xf32>
    %89 = tpu.matmul %84, %86, %cst_35 {dimension_numbers = #tpu.dot_dimension_numbers<[2], [2], [1], [1], [0, 0, 0, 1, 1, 1], [0], [0]>} : vector<2x8x8xf32>, vector<2x8x8xf32>, vector<2x8x8xf32> -> vector<2x8x8xf32>
    "tpu.trace_stop"() : () -> ()
    %cst_36 = arith.constant 0.353553385 : f32
    %90 = vector.broadcast %cst_36 : f32 to vector<2x8x8xf32>
    %91 = arith.mulf %89, %90 : vector<2x8x8xf32>
    %cst_37 = arith.constant dense<0xFF800000> : vector<2x8xf32>
    %92 = vector.multi_reduction <maximumf>, %91, %cst_37 [2] : vector<2x8x8xf32> to vector<2x8xf32>
    %93 = vector.shape_cast %92 : vector<2x8xf32> to vector<2x8x1xf32>
    %94 = vector.broadcast %93 : vector<2x8x1xf32> to vector<2x8x8xf32>
    %95 = arith.subf %91, %94 : vector<2x8x8xf32>
    %96 = math.exp %95 : vector<2x8x8xf32>
    %cst_38 = arith.constant dense<0.000000e+00> : vector<2x8xf32>
    %97 = vector.multi_reduction <add>, %96, %cst_38 [2] : vector<2x8x8xf32> to vector<2x8xf32>
    %98 = vector.shape_cast %97 : vector<2x8xf32> to vector<2x8x1xf32>
    %99 = tpu.reciprocal %98 {approx = true} : vector<2x8x1xf32> -> vector<2x8x1xf32>
    %100 = vector.broadcast %99 : vector<2x8x1xf32> to vector<2x8x8xf32>
    %101 = arith.mulf %96, %100 : vector<2x8x8xf32>
    "tpu.trace_start"() <{level = 10 : i32, message = "bqk,bkd->bqd"}> : () -> ()
    %cst_39 = arith.constant dense<0.000000e+00> : vector<2x8x8xf32>
    %102 = tpu.matmul %101, %88, %cst_39 {dimension_numbers = #tpu.dot_dimension_numbers<[2], [1], [1], [2], [0, 0, 0, 1, 1, 2], [0], [0]>} : vector<2x8x8xf32>, vector<2x8x8xf32>, vector<2x8x8xf32> -> vector<2x8x8xf32>
    "tpu.trace_stop"() : () -> ()
    %103 = vector.shape_cast %102 : vector<2x8x8xf32> to vector<16x8xf32>
    %104 = vector.extract_strided_slice %33 {offsets = [16, 0], sizes = [8, 32], strides = [1, 1]} : vector<32x32xf32> to vector<8x32xf32>
    %cst_40 = arith.constant dense<0.000000e+00> : vector<16x32xf32>
    %105 = tpu.matmul %103, %104, %cst_40 {dimension_numbers = #tpu.dot_dimension_numbers<[1], [0], [0], [1], [0, 0, 1, 1], [], []>} : vector<16x8xf32>, vector<8x32xf32>, vector<16x32xf32> -> vector<16x32xf32>
    %106 = arith.addf %82, %105 : vector<16x32xf32>
    %107 = vector.extract_strided_slice %21 {offsets = [0, 24], sizes = [16, 8], strides = [1, 1]} : vector<16x32xf32> to vector<16x8xf32>
    %108 = vector.shape_cast %107 : vector<16x8xf32> to vector<2x8x8xf32>
    %109 = vector.extract_strided_slice %26 {offsets = [0, 24], sizes = [16, 8], strides = [1, 1]} : vector<16x32xf32> to vector<16x8xf32>
    %110 = vector.shape_cast %109 : vector<16x8xf32> to vector<2x8x8xf32>
    %111 = vector.extract_strided_slice %31 {offsets = [0, 24], sizes = [16, 8], strides = [1, 1]} : vector<16x32xf32> to vector<16x8xf32>
    %112 = vector.shape_cast %111 : vector<16x8xf32> to vector<2x8x8xf32>
    "tpu.trace_start"() <{level = 10 : i32, message = "bqd,bkd->bqk"}> : () -> ()
    %cst_41 = arith.constant dense<0.000000e+00> : vector<2x8x8xf32>
    %113 = tpu.matmul %108, %110, %cst_41 {dimension_numbers = #tpu.dot_dimension_numbers<[2], [2], [1], [1], [0, 0, 0, 1, 1, 1], [0], [0]>} : vector<2x8x8xf32>, vector<2x8x8xf32>, vector<2x8x8xf32> -> vector<2x8x8xf32>
    "tpu.trace_stop"() : () -> ()
    %cst_42 = arith.constant 0.353553385 : f32
    %114 = vector.broadcast %cst_42 : f32 to vector<2x8x8xf32>
    %115 = arith.mulf %113, %114 : vector<2x8x8xf32>
    %cst_43 = arith.constant dense<0xFF800000> : vector<2x8xf32>
    %116 = vector.multi_reduction <maximumf>, %115, %cst_43 [2] : vector<2x8x8xf32> to vector<2x8xf32>
    %117 = vector.shape_cast %116 : vector<2x8xf32> to vector<2x8x1xf32>
    %118 = vector.broadcast %117 : vector<2x8x1xf32> to vector<2x8x8xf32>
    %119 = arith.subf %115, %118 : vector<2x8x8xf32>
    %120 = math.exp %119 : vector<2x8x8xf32>
    %cst_44 = arith.constant dense<0.000000e+00> : vector<2x8xf32>
    %121 = vector.multi_reduction <add>, %120, %cst_44 [2] : vector<2x8x8xf32> to vector<2x8xf32>
    %122 = vector.shape_cast %121 : vector<2x8xf32> to vector<2x8x1xf32>
    %123 = tpu.reciprocal %122 {approx = true} : vector<2x8x1xf32> -> vector<2x8x1xf32>
    %124 = vector.broadcast %123 : vector<2x8x1xf32> to vector<2x8x8xf32>
    %125 = arith.mulf %120, %124 : vector<2x8x8xf32>
    "tpu.trace_start"() <{level = 10 : i32, message = "bqk,bkd->bqd"}> : () -> ()
    %cst_45 = arith.constant dense<0.000000e+00> : vector<2x8x8xf32>
    %126 = tpu.matmul %125, %112, %cst_45 {dimension_numbers = #tpu.dot_dimension_numbers<[2], [1], [1], [2], [0, 0, 0, 1, 1, 2], [0], [0]>} : vector<2x8x8xf32>, vector<2x8x8xf32>, vector<2x8x8xf32> -> vector<2x8x8xf32>
    "tpu.trace_stop"() : () -> ()
    %127 = vector.shape_cast %126 : vector<2x8x8xf32> to vector<16x8xf32>
    %128 = vector.extract_strided_slice %33 {offsets = [24, 0], sizes = [8, 32], strides = [1, 1]} : vector<32x32xf32> to vector<8x32xf32>
    %cst_46 = arith.constant dense<0.000000e+00> : vector<16x32xf32>
    %129 = tpu.matmul %127, %128, %cst_46 {dimension_numbers = #tpu.dot_dimension_numbers<[1], [0], [0], [1], [0, 0, 1, 1], [], []>} : vector<16x8xf32>, vector<8x32xf32>, vector<16x32xf32> -> vector<16x32xf32>
    %130 = arith.addf %106, %129 : vector<16x32xf32>
    %131 = vector.broadcast %9 : vector<1x32xf32> to vector<16x32xf32>
    %132 = arith.addf %130, %131 : vector<16x32xf32>
    %c0_47 = arith.constant 0 : index
    %c0_48 = arith.constant 0 : index
    %c0_49 = arith.constant 0 : index
    %133 = vector.load %arg6[%c0_47, %c0_48, %c0_49] : memref<1x32x16xf32, #tpu.memory_space<vmem>>, vector<1x32x16xf32>
    %134 = vector.shape_cast %133 : vector<1x32x16xf32> to vector<32x16xf32>
    %cst_50 = arith.constant dense<0.000000e+00> : vector<16x16xf32>
    %135 = tpu.matmul %132, %134, %cst_50 {dimension_numbers = #tpu.dot_dimension_numbers<[1], [0], [0], [1], [0, 0, 1, 1], [], []>} : vector<16x32xf32>, vector<32x16xf32>, vector<16x16xf32> -> vector<16x16xf32>
    %c0_51 = arith.constant 0 : index
    %c0_52 = arith.constant 0 : index
    %c0_53 = arith.constant 0 : index
    %136 = vector.load %arg7[%c0_51, %c0_52, %c0_53] : memref<1x16x32xf32, #tpu.memory_space<vmem>>, vector<1x16x32xf32>
    %137 = vector.shape_cast %136 : vector<1x16x32xf32> to vector<16x32xf32>
    %cst_54 = arith.constant dense<0.000000e+00> : vector<16x32xf32>
    %138 = tpu.matmul %135, %137, %cst_54 {dimension_numbers = #tpu.dot_dimension_numbers<[1], [0], [0], [1], [0, 0, 1, 1], [], []>} : vector<16x16xf32>, vector<16x32xf32>, vector<16x32xf32> -> vector<16x32xf32>
    %139 = arith.addf %138, %132 : vector<16x32xf32>
    %140 = arith.addf %139, %3 : vector<16x32xf32>
    %cst_55 = arith.constant dense<0.000000e+00> : vector<16xf32>
    %141 = vector.multi_reduction <add>, %140, %cst_55 [1] : vector<16x32xf32> to vector<16xf32>
    %142 = vector.shape_cast %141 : vector<16xf32> to vector<16x1xf32>
    %cst_56 = arith.constant 3.200000e+01 : f32
    %143 = vector.broadcast %cst_56 : f32 to vector<16x1xf32>
    %144 = arith.divf %142, %143 : vector<16x1xf32>
    %145 = vector.broadcast %144 : vector<16x1xf32> to vector<16x32xf32>
    %146 = arith.subf %140, %145 : vector<16x32xf32>
    %147 = arith.mulf %146, %146 : vector<16x32xf32>
    %cst_57 = arith.constant dense<0.000000e+00> : vector<16xf32>
    %148 = vector.multi_reduction <add>, %147, %cst_57 [1] : vector<16x32xf32> to vector<16xf32>
    %149 = vector.shape_cast %148 : vector<16xf32> to vector<16x1xf32>
    %cst_58 = arith.constant 3.200000e+01 : f32
    %150 = vector.broadcast %cst_58 : f32 to vector<16x1xf32>
    %151 = arith.divf %149, %150 : vector<16x1xf32>
    %152 = vector.broadcast %144 : vector<16x1xf32> to vector<16x32xf32>
    %153 = arith.subf %140, %152 : vector<16x32xf32>
    %cst_59 = arith.constant 9.99999996E-13 : f32
    %154 = vector.broadcast %cst_59 : f32 to vector<16x1xf32>
    %155 = arith.addf %151, %154 : vector<16x1xf32>
    %156 = math.rsqrt %155 : vector<16x1xf32>
    %157 = vector.broadcast %156 : vector<16x1xf32> to vector<16x32xf32>
    %158 = arith.mulf %153, %157 : vector<16x32xf32>
    %159 = vector.broadcast %10 : vector<1x32xf32> to vector<16x32xf32>
    %160 = arith.mulf %158, %159 : vector<16x32xf32>
    %161 = vector.broadcast %11 : vector<1x32xf32> to vector<16x32xf32>
    %162 = arith.addf %160, %161 : vector<16x32xf32>
    %c0_60 = arith.constant 0 : index
    %c0_61 = arith.constant 0 : index
    %c0_62 = arith.constant 0 : index
    %163 = vector.load %arg8[%c0_60, %c0_61, %c0_62] : memref<1x32x64xf32, #tpu.memory_space<vmem>>, vector<1x32x64xf32>
    %164 = vector.shape_cast %163 : vector<1x32x64xf32> to vector<32x64xf32>
    %cst_63 = arith.constant dense<0.000000e+00> : vector<16x64xf32>
    %165 = tpu.matmul %162, %164, %cst_63 {dimension_numbers = #tpu.dot_dimension_numbers<[1], [0], [0], [1], [0, 0, 1, 1], [], []>} : vector<16x32xf32>, vector<32x64xf32>, vector<16x64xf32> -> vector<16x64xf32>
    %166 = vector.broadcast %16 : vector<1x64xf32> to vector<16x64xf32>
    %167 = arith.addf %165, %166 : vector<16x64xf32>
    %cst_64 = arith.constant 5.000000e-01 : f32
    %168 = vector.broadcast %cst_64 : f32 to vector<16x64xf32>
    %169 = arith.mulf %168, %167 : vector<16x64xf32>
    %cst_65 = arith.constant 0.707106769 : f32
    %170 = vector.broadcast %cst_65 : f32 to vector<16x64xf32>
    %171 = arith.mulf %167, %170 : vector<16x64xf32>
    %172 = math.erf %171 : vector<16x64xf32>
    %cst_66 = arith.constant 1.000000e+00 : f32
    %173 = vector.broadcast %cst_66 : f32 to vector<16x64xf32>
    %174 = arith.addf %173, %172 : vector<16x64xf32>
    %175 = arith.mulf %169, %174 : vector<16x64xf32>
    %c0_67 = arith.constant 0 : index
    %c0_68 = arith.constant 0 : index
    %c0_69 = arith.constant 0 : index
    %176 = vector.load %arg9[%c0_67, %c0_68, %c0_69] : memref<1x64x32xf32, #tpu.memory_space<vmem>>, vector<1x64x32xf32>
    %177 = vector.shape_cast %176 : vector<1x64x32xf32> to vector<64x32xf32>
    %cst_70 = arith.constant dense<0.000000e+00> : vector<16x32xf32>
    %178 = tpu.matmul %175, %177, %cst_70 {dimension_numbers = #tpu.dot_dimension_numbers<[1], [0], [0], [1], [0, 0, 1, 1], [], []>} : vector<16x64xf32>, vector<64x32xf32>, vector<16x32xf32> -> vector<16x32xf32>
    %179 = vector.broadcast %12 : vector<1x32xf32> to vector<16x32xf32>
    %180 = arith.addf %178, %179 : vector<16x32xf32>
    %c0_71 = arith.constant 0 : index
    %c0_72 = arith.constant 0 : index
    %c0_73 = arith.constant 0 : index
    %181 = vector.load %arg10[%c0_71, %c0_72, %c0_73] : memref<1x32x16xf32, #tpu.memory_space<vmem>>, vector<1x32x16xf32>
    %182 = vector.shape_cast %181 : vector<1x32x16xf32> to vector<32x16xf32>
    %cst_74 = arith.constant dense<0.000000e+00> : vector<16x16xf32>
    %183 = tpu.matmul %180, %182, %cst_74 {dimension_numbers = #tpu.dot_dimension_numbers<[1], [0], [0], [1], [0, 0, 1, 1], [], []>} : vector<16x32xf32>, vector<32x16xf32>, vector<16x16xf32> -> vector<16x16xf32>
    %c0_75 = arith.constant 0 : index
    %c0_76 = arith.constant 0 : index
    %c0_77 = arith.constant 0 : index
    %184 = vector.load %arg11[%c0_75, %c0_76, %c0_77] : memref<1x16x32xf32, #tpu.memory_space<vmem>>, vector<1x16x32xf32>
    %185 = vector.shape_cast %184 : vector<1x16x32xf32> to vector<16x32xf32>
    %cst_78 = arith.constant dense<0.000000e+00> : vector<16x32xf32>
    %186 = tpu.matmul %183, %185, %cst_78 {dimension_numbers = #tpu.dot_dimension_numbers<[1], [0], [0], [1], [0, 0, 1, 1], [], []>} : vector<16x16xf32>, vector<16x32xf32>, vector<16x32xf32> -> vector<16x32xf32>
    %187 = arith.addf %186, %180 : vector<16x32xf32>
    %188 = arith.addf %187, %162 : vector<16x32xf32>
    %cst_79 = arith.constant dense<0.000000e+00> : vector<16xf32>
    %189 = vector.multi_reduction <add>, %188, %cst_79 [1] : vector<16x32xf32> to vector<16xf32>
    %190 = vector.shape_cast %189 : vector<16xf32> to vector<16x1xf32>
    %cst_80 = arith.constant 3.200000e+01 : f32
    %191 = vector.broadcast %cst_80 : f32 to vector<16x1xf32>
    %192 = arith.divf %190, %191 : vector<16x1xf32>
    %193 = vector.broadcast %192 : vector<16x1xf32> to vector<16x32xf32>
    %194 = arith.subf %188, %193 : vector<16x32xf32>
    %195 = arith.mulf %194, %194 : vector<16x32xf32>
    %cst_81 = arith.constant dense<0.000000e+00> : vector<16xf32>
    %196 = vector.multi_reduction <add>, %195, %cst_81 [1] : vector<16x32xf32> to vector<16xf32>
    %197 = vector.shape_cast %196 : vector<16xf32> to vector<16x1xf32>
    %cst_82 = arith.constant 3.200000e+01 : f32
    %198 = vector.broadcast %cst_82 : f32 to vector<16x1xf32>
    %199 = arith.divf %197, %198 : vector<16x1xf32>
    %200 = vector.broadcast %192 : vector<16x1xf32> to vector<16x32xf32>
    %201 = arith.subf %188, %200 : vector<16x32xf32>
    %cst_83 = arith.constant 9.99999996E-13 : f32
    %202 = vector.broadcast %cst_83 : f32 to vector<16x1xf32>
    %203 = arith.addf %199, %202 : vector<16x1xf32>
    %204 = math.rsqrt %203 : vector<16x1xf32>
    %205 = vector.broadcast %204 : vector<16x1xf32> to vector<16x32xf32>
    %206 = arith.mulf %201, %205 : vector<16x32xf32>
    %207 = vector.broadcast %13 : vector<1x32xf32> to vector<16x32xf32>
    %208 = arith.mulf %206, %207 : vector<16x32xf32>
    %209 = vector.broadcast %14 : vector<1x32xf32> to vector<16x32xf32>
    %210 = arith.addf %208, %209 : vector<16x32xf32>
    %c0_84 = arith.constant 0 : index
    %c0_85 = arith.constant 0 : index
    %211 = vector.load %arg15[%c0_84, %c0_85] : memref<16x32xf32, #tpu.memory_space<vmem>>, vector<16x32xf32>
    tpu.vector_store %arg15[%c0_84, %c0_85], %210 {strides = array<i32>} : memref<16x32xf32, #tpu.memory_space<vmem>>, vector<16x32xf32>,
    %c0_86 = arith.constant 0 : index
    %c0_87 = arith.constant 0 : index
    %212 = vector.load %arg14[%c0_86, %c0_87] : memref<16x32xf32, #tpu.memory_space<vmem>>, vector<16x32xf32>
    tpu.vector_store %arg14[%c0_86, %c0_87], %210 {strides = array<i32>} : memref<16x32xf32, #tpu.memory_space<vmem>>, vector<16x32xf32>,
    return
  }
  func.func @transform_0(%arg0: i32) -> (i32, i32) {
    %c0_i32 = arith.constant 0 : i32
    %c0_i32_0 = arith.constant 0 : i32
    %c0_i32_1 = arith.constant 0 : i32
    return %c0_i32, %c0_i32_0 : i32, i32
  }
  func.func @transform_1(%arg0: i32) -> (i32, i32, i32) {
    %c0_i32 = arith.constant 0 : i32
    %c0_i32_0 = arith.constant 0 : i32
    %c0_i32_1 = arith.constant 0 : i32
    return %arg0, %c0_i32, %c0_i32_0 : i32, i32, i32
  }
  func.func @transform_2(%arg0: i32) -> (i32, i32, i32) {
    %c0_i32 = arith.constant 0 : i32
    %c0_i32_0 = arith.constant 0 : i32
    %c0_i32_1 = arith.constant 0 : i32
    return %arg0, %c0_i32, %c0_i32_0 : i32, i32, i32
  }
  func.func @transform_3(%arg0: i32) -> (i32, i32, i32) {
    %c0_i32 = arith.constant 0 : i32
    %c0_i32_0 = arith.constant 0 : i32
    %c0_i32_1 = arith.constant 0 : i32
    return %arg0, %c0_i32, %c0_i32_0 : i32, i32, i32
  }
  func.func @transform_4(%arg0: i32) -> (i32, i32, i32) {
    %c0_i32 = arith.constant 0 : i32
    %c0_i32_0 = arith.constant 0 : i32
    %c0_i32_1 = arith.constant 0 : i32
    return %arg0, %c0_i32, %c0_i32_0 : i32, i32, i32
  }
  func.func @transform_5(%arg0: i32) -> (i32, i32, i32) {
    %c0_i32 = arith.constant 0 : i32
    %c0_i32_0 = arith.constant 0 : i32
    %c0_i32_1 = arith.constant 0 : i32
    return %arg0, %c0_i32, %c0_i32_0 : i32, i32, i32
  }
  func.func @transform_6(%arg0: i32) -> (i32, i32, i32) {
    %c0_i32 = arith.constant 0 : i32
    %c0_i32_0 = arith.constant 0 : i32
    %c0_i32_1 = arith.constant 0 : i32
    return %arg0, %c0_i32, %c0_i32_0 : i32, i32, i32
  }
  func.func @transform_7(%arg0: i32) -> (i32, i32, i32) {
    %c0_i32 = arith.constant 0 : i32
    %c0_i32_0 = arith.constant 0 : i32
    %c0_i32_1 = arith.constant 0 : i32
    return %arg0, %c0_i32, %c0_i32_0 : i32, i32, i32
  }
  func.func @transform_8(%arg0: i32) -> (i32, i32, i32) {
    %c0_i32 = arith.constant 0 : i32
    %c0_i32_0 = arith.constant 0 : i32
    %c0_i32_1 = arith.constant 0 : i32
    return %arg0, %c0_i32, %c0_i32_0 : i32, i32, i32
  }
  func.func @transform_9(%arg0: i32) -> (i32, i32, i32) {
    %c0_i32 = arith.constant 0 : i32
    %c0_i32_0 = arith.constant 0 : i32
    %c0_i32_1 = arith.constant 0 : i32
    return %arg0, %c0_i32, %c0_i32_0 : i32, i32, i32
  }
  func.func @transform_10(%arg0: i32) -> (i32, i32, i32) {
    %c0_i32 = arith.constant 0 : i32
    %c0_i32_0 = arith.constant 0 : i32
    %c0_i32_1 = arith.constant 0 : i32
    return %arg0, %c0_i32, %c0_i32_0 : i32, i32, i32
  }
  func.func @transform_11(%arg0: i32) -> (i32, i32, i32) {
    %c0_i32 = arith.constant 0 : i32
    %c0_i32_0 = arith.constant 0 : i32
    %c0_i32_1 = arith.constant 0 : i32
    return %arg0, %c0_i32, %c0_i32_0 : i32, i32, i32
  }
  func.func @transform_12(%arg0: i32) -> (i32, i32, i32) {
    %c0_i32 = arith.constant 0 : i32
    %c0_i32_0 = arith.constant 0 : i32
    %c0_i32_1 = arith.constant 0 : i32
    return %arg0, %c0_i32, %c0_i32_0 : i32, i32, i32
  }
  func.func @transform_13(%arg0: i32) -> (i32, i32) {
    %c0_i32 = arith.constant 0 : i32
    %c0_i32_0 = arith.constant 0 : i32
    %c0_i32_1 = arith.constant 0 : i32
    return %c0_i32, %c0_i32_0 : i32, i32
  }
}

</mosaic_0001>

<bundles_post_ra>
// kernel: call.1
= control target key start
LH: loop header
LB: loop body
LE: loop exit
PB: predicated region body
PF: predicated region fallthrough
CT: control target
= control target key end

     0   :  { %s4823_s0 = inlined_call_operand.hbm [shape: f32[16,32], index: 0, kind: input, shape index: {}]   ;;  %s4824_s1 = inlined_call_operand.vmem [shape: f32[2,32,32], index: 1, kind: input, shape index: {}]   ;;  %s4825_s2 = inlined_call_operand.vmem [shape: f32[2,32,32], index: 2, kind: input, shape index: {}]   ;;  %s4826_s3 = inlined_call_operand.vmem [shape: f32[2,32,32], index: 3, kind: input, shape index: {}]   ;;  %s4827_s4 = inlined_call_operand.vmem [shape: f32[2,32,32], index: 4, kind: input, shape index: {}]   ;;  %s4828_s5 = inlined_call_operand.vmem [shape: f32[2,32,16], index: 5, kind: input, shape index: {}]   ;;  %s4829_s6 = inlined_call_operand.hbm [shape: f32[2,16,32], index: 6, kind: input, shape index: {}]   ;;  %s4830_s7 = inlined_call_operand.vmem [shape: f32[2,32,64], index: 7, kind: input, shape index: {}]   ;;  %s4831_s8 = inlined_call_operand.vmem [shape: f32[2,64,32], index: 8, kind: input, shape index: {}]   ;;  %s4832_s9 = inlined_call_operand.vmem [shape: f32[2,32,16], index: 9, kind: input, shape index: {}]   ;;  %s4833_s10 = inlined_call_operand.hbm [shape: f32[2,16,32], index: 10, kind: input, shape index: {}]   ;;  %s4834_s11 = inlined_call_operand.vmem [shape: f32[2,9,32], index: 11, kind: input, shape index: {}]   ;;  %s4835_s12 = inlined_call_operand.vmem [shape: f32[2,1,64], index: 12, kind: input, shape index: {}]   ;;  %s4836_s13 = inlined_call_operand.hbm [shape: f32[16,32], index: 13, kind: output, shape index: {}]  }
   0x1   :  { %4847 = sst [smem:[#allocation17_spill]] %s4823_s0 }
   0x2   :  { %4848 = sst [smem:[#allocation18_spill]] %s4824_s1 }
   0x3   :  { %4849 = sst [smem:[#allocation19_spill]] %s4825_s2 }
   0x4   :  { %4850 = sst [smem:[#allocation20_spill]] %s4826_s3 }
   0x5   :  { %4851 = sst [smem:[#allocation21_spill]] %s4827_s4 }
   0x6   :  { %4852 = sst [smem:[#allocation22_spill]] %s4828_s5 }
   0x7   :  { %4853 = sst [smem:[#allocation23_spill]] %s4829_s6 }
   0x8   :  { %4854 = sst [smem:[#allocation24_spill]] %s4833_s10 }
   0x9   :  { %18 = vsyncpa [#allocation4], 0 }
   0xa   :  { %19 = vsyncpa [#allocation7], 0 }
   0xb   :  { %21 = vsyncpa [#allocation7 + $0x1], 0 }
   0xc   :  { %22 = vsyncpa [#allocation5], 0  ;;  %s4278_s25 = smov 0   ;;  %s4280_s26 = smov 0  }
   0xd   :  { %s4282_s27 = smov 0   ;;  %s4284_s28 = smov 0  }
   0xe LB: > { %4855 = sst [smem:[#allocation13_spill]] %s4185_s26  ;;  %s4299_s29 = sadd.s32 1, %s4193_s28   ;;  %s4193_s28 = sphi %s4284_s28, %s4882_s28   ;;  %s4189_s27 = sphi %s4282_s27, %s4885_s27   ;;  %s4185_s26 = sphi %s4280_s26, %s4884_s26   ;;  %s4181_s25 = sphi %s4278_s25, %s4883_s25  }
   0xf   : > { %4856 = sst [smem:[#allocation14_spill]] %s4189_s27  ;;  %s186_s30 = sadd.s32 1, %s4189_s27 }
  0x10   : > { %4857 = sst [smem:[#allocation15_spill]] %s4299_s29  ;;  %s183_s14 = ssub.s32 %s4193_s28, %s4299_s29 }
  0x11   : > { %p193_p0 = scmp.ne.s32.totalorder %s4189_s27, %s4185_s26  ;;  %p184_p1 = scmp.eq.s32.totalorder %s183_s14, 0 }
  0x12   : > { %p194_p2 = scmp.eq.s32.totalorder %s4193_s28, 0  ;;  %p3946_p4 = scmp.lt.s32.totalorder %s4193_s28, 2 }
  0x13   : > { %s4308_s15 = scalar_select %p184_p1, %s4189_s27, %s186_s30  }
  0x14   : > { %p195_p3 = por %p194_p2, %p193_p0  ;;  %s453_s16 = sand.u32 1, %s4193_s28  }
  0x15   : > { %4858 = sst [smem:[#allocation16_spill]] %s4308_s15  ;;  %s455_s17 = sand.u32 1, %s4189_s27  }
  0x16   : > { %s4313_s18 = sshll.u32 %s455_s17, 4  ;;  %s4837_s19 = sshll.u32 %s4193_s28, 8 }
  0x17   : > { %s4859_s6 = sld [smem:[#allocation23_spill]]  ;;  %s457_s23 = scalar_lea.vmem [#allocation6], %s4313_s18 }
  0x18   : > { %s464_s24 = sshll.u32 %s457_s23, 4  ;;  %p4324_p5 = pnand %p3946_p4, %p195_p3  ;;  %s4328_s24 = int_to_ptr.vmem [resolvable:$true] %s464_s24 }
  0x19   : > { %s4330_s14 = scalar_lea.sflag [#allocation7], %s453_s16 }
  0x1a   : > { %p4039_p7 = pneg %p4324_p5 }
  0x1d   : > { %s4321_s22 = scalar_lea.hbm %s4859_s6, %s4837_s19  ;;  %s4042_s23 = scalar_lea.hbm %s4859_s6, 512 }
  0x1e   : > { %s4037_s17 = scalar_lea.hbm %s4321_s22, 256  ;;  %p4043_p10 = scmp.lt.u32.totalorder %s4321_s22, %s4859_s6 }
  0x1f   : > { %p4038_p6 = scmp.ne.s32.totalorder %s4321_s22, %s4037_s17  ;;  %p4044_p11 = scmp.lt.u32.totalorder %s4042_s23, %s4037_s17 }
  0x20   : > { %p4046_p13 = scmp.lt.u32.totalorder %s4037_s17, %s4321_s22 }
  0x21   : > { %p4040_p8 = pnand %p4039_p7, %p4038_p6  ;;  %p4045_p12 = por %p4044_p11, %p4043_p10 }
  0x23   : > { %p4041_p9 = pneg %p4040_p8  ;;  %p4047_p0 = por %p4046_p13, %p4045_p12 }
  0x25   : > { %p4048_p1 = pnand %p4047_p0, %p4041_p9 }
  0x27   : > { %4051 = shalt.err (!%p4048_p1)
}
  0x28   : > { %s4052_s16 = scalar_lea.vmem %s4328_s24, 256  ;;  %s4195_s20 = smov [#allocation6]  }
  0x29   : > { %p4053_p2 = scmp.ne.s32.totalorder %s4328_s24, %s4052_s16  ;;  %s4057_s21 = sshll.u32 %s4195_s20, 4  ;;  %s4058_s21 = int_to_ptr.vmem [resolvable:$false] %s4057_s21 }
  0x2a   : > { %s4059_s15 = scalar_lea.vmem %s4058_s21, 512  ;;  %p4060_p6 = scmp.lt.s32.totalorder %s4328_s24, %s4058_s21 }
  0x2b   : > { %p4055_p3 = pnand %p4053_p2, %p4039_p7  ;;  %p4061_p8 = scmp.lt.s32.totalorder %s4059_s15, %s4052_s16 }
  0x2d   : > { %p4056_p4 = pneg %p4055_p3  ;;  %p4062_p10 = por %p4061_p8, %p4060_p6 }
  0x2f   : > { %p4063_p11 = pnand %p4062_p10, %p4056_p4 }
  0x31   : > { %4066 = shalt.err (!%p4063_p11)
}
  0x32   : > { %s4839_s19 = smov 128   ;;  %s4197_s17 = smov 8  }
  0x33   : > { %3941 = dma.hbm_to_vmem [thread:$0]  (!%p4324_p5), %s4321_s22, 256, %s4328_s24, %s4330_s14, %s4839_s19, %s4839_s19, %s4197_s17  }
  0x34   : > { %s4861_s23 = sshll.u32 %s4193_s28, 8  ;;  %s4862_s10 = sld [smem:[#allocation24_spill]] }
  0x35   : > { %s502_s15 = scalar_lea.vmem [#allocation8], %s4313_s18  ;;  %s4370_s27 = sadd.s32 4294967295, %s4193_s28  }
  0x36   : > { %s509_s6 = sshll.u32 %s502_s15, 4  ;;  %p199_p9 = scmp.ne.s32.totalorder %s4185_s26, %s4181_s25  ;;  %s4384_s6 = int_to_ptr.vmem [resolvable:$true] %s509_s6 }
  0x37   : > { %p4841_p12 = scmp.eq.s32.totalorder %s4370_s27, 0  ;;  %p3448_p13 = scmp.ge.s32.totalorder %s4193_s28, 1 }
  0x38   : > { %p387_p0 = scmp.lt.s32.totalorder %s4193_s28, 3  ;;  %s4198_s24 = smov [#allocation3]  }
  0x39   : > { %p4380_p2 = por %p4841_p12, %p199_p9  ;;  %s4390_s25 = sshll.u32 %s4198_s24, 4  ;;  %s400_s25 = int_to_ptr.vmem [resolvable:$true] %s4390_s25 }
  0x3a   : > { %s4366_s21 = scalar_lea.hbm %s4862_s10, %s4861_s23  ;;  %p4386_p3 = pnand %p3448_p13, %p387_p0 }
  0x3b   : > { %s4863_s22 = scalar_select %p4380_p2, 1, 0 }
  0x3c   : > { %s4864_s18 = scalar_select %p4386_p3, 1, 0 }
  0x3d   : > { %s4067_s28 = scalar_lea.hbm %s4366_s21, 256  ;;  %s4072_s20 = scalar_lea.hbm %s4862_s10, 512 }
  0x3e   : > { %p4068_p6 = scmp.ne.s32.totalorder %s4366_s21, %s4067_s28  ;;  %p4073_p11 = scmp.lt.u32.totalorder %s4366_s21, %s4862_s10 }
  0x3f   : > { %p4074_p9 = scmp.lt.u32.totalorder %s4072_s20, %s4067_s28  ;;  %p4076_p0 = scmp.lt.u32.totalorder %s4067_s28, %s4366_s21 }
  0x40   : > { %p4070_p8 = pnand %p4068_p6, %p4039_p7 }
  0x41   : > { %p4075_p13 = por %p4074_p9, %p4073_p11 }
  0x42   : > { %p4071_p10 = pneg %p4070_p8 }
  0x43   : > { %p4077_p1 = por %p4076_p0, %p4075_p13 }
  0x45   : > { %p4078_p12 = pnand %p4077_p1, %p4071_p10 }
  0x47   : > { %4081 = shalt.err (!%p4078_p12)
}
  0x48   : > { %s4082_s24 = scalar_lea.vmem %s4384_s6, 256  ;;  %s4199_s23 = smov [#allocation8]  }
  0x49   : > { %p4083_p6 = scmp.ne.s32.totalorder %s4384_s6, %s4082_s24  ;;  %s4087_s16 = sshll.u32 %s4199_s23, 4  ;;  %s4088_s16 = int_to_ptr.vmem [resolvable:$false] %s4087_s16 }
  0x4a   : > { %s4089_s19 = scalar_lea.vmem %s4088_s16, 512  ;;  %p4090_p2 = scmp.lt.s32.totalorder %s4384_s6, %s4088_s16 }
  0x4b   : > { %p4085_p8 = pnand %p4083_p6, %p4039_p7  ;;  %p4091_p11 = scmp.lt.s32.totalorder %s4089_s19, %s4082_s24 }
  0x4d   : > { %p4086_p4 = pneg %p4085_p8  ;;  %p4092_p9 = por %p4091_p11, %p4090_p2 }
  0x4f   : > { %p4093_p13 = pnand %p4092_p9, %p4086_p4 }
  0x51   : > { %4096 = shalt.err (!%p4093_p13)
}
  0x52   : > { %s4865_s28 = smov 128   ;;  %p4866_p7 = scmp.eq.s32.totalorder %s4370_s27, 0 }
  0x53   : > { %3944 = dma.hbm_to_vmem [thread:$0]  (!%p4324_p5), %s4366_s21, 256, %s4384_s6, %s4330_s14, %s4865_s28, %s4865_s28, %s4197_s17  }
  0x54   : > { %p4867_p12 = pneg %p4386_p3  ;;  %s4869_s0 = sld [smem:[#allocation17_spill]] }
  0x56   : > { %p4427_p1 = pnand %p4867_p12, %p4866_p7 }
  0x58   : > { %p4099_p4 = pneg %p4427_p1 }
  0x5a   : > { %s4097_s24 = scalar_lea.hbm %s4869_s0, 256 }
  0x5b   : > { %p4098_p2 = scmp.ne.s32.totalorder %s4869_s0, %s4097_s24  ;;  %p4104_p0 = scmp.lt.u32.totalorder %s4097_s24, %s4869_s0 }
  0x5d   : > { %p4100_p5 = pnand %p4099_p4, %p4098_p2 }
  0x5f   : > { %p4101_p10 = pneg %p4100_p5 }
  0x61   : > { %p4106_p6 = pnand %p4104_p0, %p4101_p10 }
  0x63   : > { %4109 = shalt.err (!%p4106_p6)
}
  0x64   : > { %s4110_s21 = scalar_lea.vmem %s400_s25, 256  ;;  %p4118_p13 = scmp.lt.s32.totalorder %s400_s25, %s400_s25 }
  0x65   : > { %p4111_p8 = scmp.ne.s32.totalorder %s400_s25, %s4110_s21  ;;  %p4119_p7 = scmp.lt.s32.totalorder %s4110_s21, %s4110_s21 }
  0x67   : > { %p4113_p11 = pnand %p4111_p8, %p4099_p4  ;;  %p4120_p12 = por %p4119_p7, %p4118_p13 }
  0x69   : > { %p4114_p9 = pneg %p4113_p11 }
  0x6b   : > { %p4121_p3 = pnand %p4120_p12, %p4114_p9 }
  0x6d   : > { %4124 = shalt.err (!%p4121_p3)
}
  0x6e   : > { %3937 = dma.hbm_to_vmem [thread:$0]  (!%p4427_p1), %s4869_s0, 256, %s400_s25, [#allocation4], %s4865_s28, %s4865_s28, %s4197_s17  }
  0x6f   : > { %p4870_p2 = scmp.ne.s32.totalorder %s4864_s18, 0 }
  0x70   : > { %p4871_p4 = scmp.eq.s32.totalorder (!%p4870_p2), %s4370_s27, 0 }
  0x71   : > { %535 = sbr.rel (%p4870_p2) target bundleno = 5104 (0x13f0), region = 72 }
  0x78   : > { %4168 = dma.done.wait (%p4871_p4), [#allocation4], 256   ;;  %p4872_p5 = pmov %p4871_p4 }
  0x79   : > { %s541_s20 = sand.u32 1, %s4370_s27   ;;  %s543_s30 = sand.u32 1, %s4185_s26  }
  0x7a   : > { %4170 = vsyncadd (%p4872_p5), [#allocation4], 4294967040  ;;  %s4458_s24 = sshll.u32 %s543_s30, 4  ;;  %s542_s23 = scalar_lea.sflag [#allocation7], %s541_s20 }
  0x7b   : > { %p4873_p3 = scmp.ne.s32.totalorder %s4863_s22, 0 }
  0x7d   : > { %4172 = dma.done.wait (%p4873_p3), %s542_s23, 512  }
  0x7e   : > { %4174 = vsyncadd (%p4873_p3), %s542_s23, 4294966784  ;;  %p645_p1 = scmp.lt.s32.totalorder %s4370_s27, 1  ;;  %s4874_s1 = sld [smem:[#allocation18_spill]] }
  0x7f   : > { %s4875_s2 = sld [smem:[#allocation19_spill]]  ;;  %s4876_s3 = sld [smem:[#allocation20_spill]] }
  0x80   : > { %s4467_s17 = scalar_select %p645_p1, %s4370_s27, 1 }
  0x81   : > { %s4877_s4 = sld [smem:[#allocation21_spill]]  ;;  %s4878_s5 = sld [smem:[#allocation22_spill]] }
  0x82   : > { %s3538_s18 = sshll.u32 %s4467_s17, 5  ;;  %s3544_s25 = sshll.u32 %s4467_s17, 6 }
  0x83   : > { %s4495_s21 = scalar_lea.vmem %s4830_s7, %s3538_s18  ;;  %s4500_s15 = scalar_lea.vmem %s4831_s8, %s3544_s25 }
  0x84   : > { %s649_s14 = scalar_lea.vmem %s4874_s1, %s3538_s18  ;;  %s4505_s16 = scalar_lea.vmem %s4832_s9, %s3538_s18 }
  0x85   : > { %s654_s22 = scalar_lea.vmem %s4875_s2, %s3538_s18  ;;  %s4480_s30 = scalar_lea.vmem %s4876_s3, %s3538_s18 }
  0x86   : > { %s3546_s23 = sshll.u32 %s4467_s17, 4  ;;  %s692_s26 = scalar_lea.vmem %s4835_s12, %s4467_s17 }
  0x87   : > { %s4485_s0 = scalar_lea.vmem %s4877_s4, %s3538_s18  ;;  %s4490_s29 = scalar_lea.vmem %s4878_s5, %s3538_s18 }
  0x88   : > { %s4515_s28 = scalar_lea.vmem %s4834_s11, %s3546_s23  ;;  %s554_s6 = scalar_lea.vmem [#allocation8], %s4458_s24 }
  0x89   : > { %p4879_p10 = scmp.ne.s32.totalorder %s4370_s27, 0 }
  0x8a   : > { %v697_v0 = vld [vmem:[#allocation3] sm:$0xff] (!%p4879_p10)  ;;  %vm699_vm0 = vcmask (!%p4879_p10), 261120   ;;  %v698_v1 = vld [vmem:[#allocation3 + $0x8] sm:$0xff] (!%p4879_p10) }
  0x8b   : > { %696 = sbr.rel (%p4879_p10) target bundleno = 146 (0x92), region = 88  ;;  %700 = vst.msk [vmem:[#allocation2] sm:$0xff] (!%p4879_p10), %vm699_vm0, %v697_v0  ;;  %701 = vst.msk [vmem:[#allocation2 + $0x8] sm:$0xff] (!%p4879_p10), %vm699_vm0, %v698_v1 }
  0x92 PF: > { %v797_v2 = vld [vmem:[%s654_s22] sm:$0xff]  ;;  %v798_v3 = vld [vmem:[%s654_s22 + $0x8] sm:$0xff]  ;;  %vm715_vm1 = vcmask 261120   ;;  %v799_v7 = vld [vmem:[%s654_s22 + $0x10] sm:$0xff]  ;;  %v4200_v16 = vmov 0.0   ;;  %vm4201_vm2 = vmmov 0   ;;  %v711_v17 = vlaneseq }
  0x93   : > { %v707_v4 = vld [vmem:[%s649_s14] sm:$0xff]  ;;  %v3852_v5 = vpack.c.bf16 %v798_v3, %v797_v2  ;;  %v708_v6 = vld [vmem:[%s649_s14 + $0x8] sm:$0xff]  ;;  %v800_v8 = vld [vmem:[%s654_s22 + $0x18] sm:$0xff]  ;;  %vm967_vm3 = vcmask 64512   ;;  %s4202_s1 = smov 120   ;;  %s4203_s2 = smov 112  }
  0x94   : > { %v3844_v9 = vpack.c.bf16 %v708_v6, %v707_v4  ;;  %v3856_v10 = vpack.c.bf16 %v800_v8, %v799_v7  ;;  %v709_v11 = vld [vmem:[%s649_s14 + $0x10] sm:$0xff]  ;;  %v710_v12 = vld [vmem:[%s649_s14 + $0x18] sm:$0xff]  ;;  %v4520_v13 = vld [vmem:[#allocation2] sm:$0xff]  ;;  %v4537_v18 = vshrl.u32 %v711_v17, 7  ;;  %s4204_s3 = smov 104   ;;  %vm2709_vm4 = vcmask 130048  }
  0x95   : > { %3853 = vmatprep.subr.bf16.mxu1 %v3852_v5  ;;  %v3848_v14 = vpack.c.bf16 %v710_v12, %v709_v11  ;;  %3664 = vmatprep.mubr.msk.f32.mxu1 %vm715_vm1, %v4520_v13  ;;  %v4526_v15 = vld [vmem:[#allocation2 + $0x8] sm:$0xff]  ;;  %v4541_v20 = vld [vmem:[%s4515_s28] sm:$0xff]  ;;  %v882_v34 = vld [vmem:[%s4480_s30 + $0x10] sm:$0xff]  ;;  %vm2945_vm5 = vcmask 523264   ;;  %p3948_p0 = scmp.eq.s32.totalorder %s4370_s27, 1 }
  0x96   : > { %3855 = vmatpush3.bf16.msra.mxu1 %v3852_v5  ;;  %3845 = vmatprep.subr.bf16.mxu0 %v3844_v9  ;;  %v803_v19 = vsub.s32 1, %v4537_v18  ;;  %v713_v21 = vsub.s32 0, %v4537_v18  ;;  %v880_v32 = vld [vmem:[%s4480_s30] sm:$0xff]  ;;  %v881_v33 = vld [vmem:[%s4480_s30 + $0x8] sm:$0xff]  ;;  %v883_v36 = vld [vmem:[%s4480_s30 + $0x18] sm:$0xff]  ;;  %v886_v51 = vsub.s32 2, %v4537_v18 }
  0x97   : > { %3847 = vmatpush3.bf16.msra.mxu0 %v3844_v9  ;;  %3857 = vmatprep.subr.bf16.mxu1 %v3856_v10  ;;  %v3860_v35 = vpack.c.bf16 %v881_v33, %v880_v32  ;;  %v3864_v37 = vpack.c.bf16 %v883_v36, %v882_v34 }
  0x98   : > { %3849 = vmatprep.subr.bf16.mxu0 %v3848_v14  ;;  %3653 = vmatprep.mubr.msk.f32.mxu0 %vm715_vm1, %v4520_v13  ;;  %v804_v22 = vrot.slane %v4541_v20, %v803_v19  ;;  %v714_v23 = vrot.slane %v4541_v20, %v713_v21  ;;  %v887_v52 = vrot.slane %v4541_v20, %v886_v51 }
  0x9a   : > { %3859 = vmatpush3.bf16.msra.mxu1 %v3856_v10 }
  0x9b   : > { %3851 = vmatpush3.bf16.msra.mxu0 %v3848_v14  ;;  %3678 = vmatprep.subr.mxu1 %v4200_v16 }
  0x9c   : > { %3861 = vmatprep.subr.bf16.mxu0 %v3860_v35 }
  0x9d   : > { %3665 = vmatmul.mubr.msk.f32.vlgmr.msra.gmra.mrb[0].mxu1 %vm715_vm1, %v4526_v15 }
  0x9e   : > { %3654 = vmatmul.mubr.msk.f32.vlgmr.msra.gmra.mrb[0].mxu0 %vm715_vm1, %v4526_v15  ;;  %3680 = vmatprep.mubr.msk.f32.mxu1 %vm4201_vm2, %v4200_v16 }
  0x9f   : > { %3675 = vmatprep.mubr.msk.f32.mxu0 %vm715_vm1, %v4520_v13  ;;  %3863 = vmatpush3.bf16.msra.mxu0 %v3860_v35 }
  0xa0   : > { %3865 = vmatprep.subr.bf16.mxu0 %v3864_v37 }
  0xa3   : > { %3867 = vmatpush3.bf16.msra.mxu0 %v3864_v37 }
  0xa4   : > { %3688 = vmatprep.subr.mxu0 %v4200_v16 }
  0xa6   : > { %3676 = vmatmul.mubr.msk.f32.vlgmr.msra.gmra.mrb[2].mxu0 %vm715_vm1, %v4526_v15 }
  0xa7   : > { %3690 = vmatprep.mubr.msk.f32.mxu0 %vm4201_vm2, %v4200_v16 }
 0x170   : > { %v3666_v24 = vpop.f32.mrb[0].mxu1 }
 0x171   : > { %v4546_v25 = vadd.f32 %v3666_v24, %v804_v22  ;;  %v871_v26 = vpop.f32.mrb[1].mxu1  ;;  %v3655_v27 = vpop.f32.mrb[0].mxu0 }
 0x172   : > { %v4548_v28 = vadd.f32 %v871_v26, %v804_v22  ;;  %v788_v29 = vpop.f32.mrb[1].mxu0  ;;  %v4552_v30 = vadd.f32 %v3655_v27, %v714_v23 }
 0x173   : > { %1370 = vrot.lane.b32.xlu1 %v4546_v25, %s4202_s1  ;;  %v4554_v31 = vadd.f32 %v788_v29, %v714_v23 }
 0x174   : > { %3679 = vmatpush3.xpose.msk.msra.mxu1 %vm967_vm3, %v4548_v28 }
 0x175   : > { %3683 = vmatprep.subr.mxu1 %v4200_v16 }
 0x177   : > { %1368 = vrot.lane.b32.xlu1 %v4552_v30, %s4202_s1  ;;  %3681 = vmatmul.mubr.msk.f32.vlgmr.msra.gmra.mrb[2].mxu1 %vm967_vm3, %v4554_v31 }
 0x178   : > { %3684 = vmatpush3.xpose.msk.msra.mxu1 %vm967_vm3, %v4546_v25  ;;  %3685 = vmatprep.mubr.msk.f32.mxu1 %vm4201_vm2, %v4200_v16 }
 0x179   : > { %3693 = vmatprep.subr.mxu1 %v4200_v16  ;;  %v3677_v53 = vpop.f32.mrb[2].mxu0 }
 0x17a   : > { %v4586_v54 = vadd.f32 %v3677_v53, %v887_v52  ;;  %v954_v55 = vpop.f32.mrb[3].mxu0 }
 0x17b   : > { %3686 = vmatmul.mubr.msk.f32.vlgmr.msra.gmra.mrb[4].mxu1 %vm967_vm3, %v4552_v30  ;;  %v4588_v56 = vadd.f32 %v954_v55, %v887_v52 }
 0x17c   : > { %3695 = vmatprep.mubr.msk.f32.mxu1 %vm4201_vm2, %v4200_v16  ;;  %3694 = vmatpush3.msra.mxu1 %v4586_v54 }
 0x17d   : > { %3689 = vmatpush3.msra.mxu0 %v4588_v56  ;;  %3703 = vmatprep.subr.mxu1 %v4200_v16 }
 0x17e   : > { %3698 = vmatprep.subr.mxu0 %v4200_v16 }
 0x1e5   : > { %v1371_v62 = vpop.permute.xlu1 %1370 }
 0x1e9   : > { %v1369_v0 = vpop.permute.xlu1 %1368 }
 0x24a   : > { %v1040_v38 = vpop.f32.mrb[2].mxu1 }
 0x24b   : > { %v3682_v39 = vpop.f32.mrb[3].mxu1  ;;  %v1120_v48 = vmul.f32 0.35355338, %v1040_v38 }
 0x24d   : > { %v1122_v50 = vsel %vm967_vm3, %v1120_v48, -inf }
 0x24e   : > { %v1116_v40 = vpop.f32.mrb[4].mxu1 }
 0x24f   : > { %v1121_v41 = vmul.f32 0.35355338, %v1116_v40  ;;  %v3687_v42 = vpop.f32.mrb[5].mxu1 }
 0x251   : > { %v1125_v43 = vsel %vm967_vm3, %v1121_v41, -inf }
 0x252   : > { %1126 = vmax.xlane.f32.xlu0 %v1125_v43 }
 0x2df   : > { %v1127_v44 = vpop.xlane.xlu0 %1126 }
 0x2e0   : > { %v1129_v45 = vsub.f32 %v1121_v41, %v1127_v44 }
 0x2e2   : > { %v1132_v46 = vmul.f32 1.442695, %v1129_v45 }
 0x2e4   : > { %3993 = vpow2.f32 %v1132_v46 }
 0x2ee   : > { %v3994_v47 = vpop.eup %3993 }
 0x2ef   : > { %v1137_v49 = vsel %vm967_vm3, %v3994_v47, 0.0 }
 0x2f0   : > { %1138 = vadd.xlane.f32.xlu0 %v1137_v49 }
 0x2f4   : > { %1123 = vmax.xlane.f32.xlu0 %v1122_v50 }
 0x30a   : > { %1292 = vrot.lane.b32.xlu0 %v4548_v28, %s4202_s1 }
 0x30e   : > { %1290 = vrot.lane.b32.xlu0 %v4554_v31, %s4202_s1 }
 0x37d   : > { %v1139_v57 = vpop.xlane.xlu0 %1138 }
 0x37e   : > { %3995 = vrcp.f32 %v1139_v57 }
 0x381   : > { %v1124_v58 = vpop.xlane.xlu0 %1123 }
 0x382   : > { %v1128_v59 = vsub.f32 %v1120_v48, %v1124_v58 }
 0x384   : > { %v1130_v60 = vmul.f32 1.442695, %v1128_v59 }
 0x385   : > { %v1293_v6 = vpop.permute.xlu0 %1292 }
 0x386   : > { %3997 = vpow2.f32 %v1130_v60 }
 0x388   : > { %v3996_v61 = vpop.eup %3995 }
 0x389   : > { %v1143_v63 = vmul.f32 %v3996_v61, %v3994_v47  ;;  %v1291_v8 = vpop.permute.xlu0 %1290 }
 0x38b   : > { %3696 = vmatmul.mubr.msk.f32.vlgmr.msra.gmra.mrb[6].mxu1 %vm967_vm3, %v1143_v63  ;;  %v964_v63 = vld [vmem:[%s4485_s0 + $0x8] sm:$0xff] }
 0x38c   : > { %3704 = vmatpush3.xpose.msk.msra.mxu1 %vm967_vm3, %v1371_v62  ;;  %3705 = vmatprep.mubr.msk.f32.mxu1 %vm4201_vm2, %v4200_v16 }
 0x38d   : > { %3713 = vmatprep.subr.mxu1 %v4200_v16 }
 0x38f   : > { %3706 = vmatmul.mubr.msk.f32.vlgmr.msra.gmra.mrb[8].mxu1 %vm967_vm3, %v1369_v0  ;;  %v963_v0 = vld [vmem:[%s4485_s0] sm:$0xff] }
 0x390   : > { %v3998_v1 = vpop.eup %3997  ;;  %3715 = vmatprep.mubr.msk.f32.mxu1 %vm4201_vm2, %v4200_v16 }
 0x391   : > { %v1134_v2 = vsel %vm967_vm3, %v3998_v1, 0.0 }
 0x392   : > { %1135 = vadd.xlane.f32.xlu1 %v1134_v2 }
 0x3a3   : > { %1548 = vrot.lane.b32.xlu1 %v4586_v54, %s4202_s1 }
 0x3a7   : > { %1788 = vrot.lane.b32.xlu1 %v4548_v28, %s4203_s2 }
 0x3ab   : > { %1866 = vrot.lane.b32.xlu1 %v4546_v25, %s4203_s2 }
 0x41f   : > { %v1136_v3 = vpop.xlane.xlu1 %1135 }
 0x420   : > { %3999 = vrcp.f32 %v1136_v3 }
 0x423   : > { %v1549_v4 = vpop.permute.xlu1 %1548 }
 0x424   : > { %3714 = vmatpush3.msra.mxu1 %v1549_v4 }
 0x425   : > { %3728 = vmatprep.subr.mxu1 %v4200_v16 }
 0x427   : > { %v1789_v35 = vpop.permute.xlu1 %1788 }
 0x42a   : > { %v4000_v5 = vpop.eup %3999 }
 0x42b   : > { %v1142_v7 = vmul.f32 %v4000_v5, %v3998_v1  ;;  %v1867_v36 = vpop.permute.xlu1 %1866 }
 0x42d   : > { %3691 = vmatmul.mubr.msk.f32.vlgmr.msra.gmra.mrb[4].mxu0 %vm967_vm3, %v1142_v7 }
 0x42e   : > { %3699 = vmatpush3.xpose.msk.msra.mxu0 %vm967_vm3, %v1293_v6  ;;  %3700 = vmatprep.mubr.msk.f32.mxu0 %vm4201_vm2, %v4200_v16 }
 0x42f   : > { %3708 = vmatprep.subr.mxu0 %v4200_v16 }
 0x431   : > { %3701 = vmatmul.mubr.msk.f32.vlgmr.msra.gmra.mrb[6].mxu0 %vm967_vm3, %v1291_v8 }
 0x432   : > { %3710 = vmatprep.mubr.msk.f32.mxu0 %vm4201_vm2, %v4200_v16 }
 0x45e   : > { %v4622_v9 = vpop.f32.mrb[6].mxu1 }
 0x45f   : > { %v3697_v10 = vpop.f32.mrb[7].mxu1 }
 0x462   : > { %v1442_v11 = vpop.f32.mrb[8].mxu1 }
 0x463   : > { %v1447_v12 = vmul.f32 0.35355338, %v1442_v11  ;;  %v3707_v14 = vpop.f32.mrb[9].mxu1 }
 0x465   : > { %v1451_v17 = vsel %vm967_vm3, %v1447_v12, -inf }
 0x466   : > { %1452 = vmax.xlane.f32.xlu0 %v1451_v17 }
 0x47c   : > { %1786 = vrot.lane.b32.xlu0 %v4554_v31, %s4203_s2 }
 0x4f3   : > { %v1453_v19 = vpop.xlane.xlu0 %1452 }
 0x4f4   : > { %v1455_v21 = vsub.f32 %v1447_v12, %v1453_v19 }
 0x4f6   : > { %v1458_v22 = vmul.f32 1.442695, %v1455_v21 }
 0x4f7   : > { %v1787_v40 = vpop.permute.xlu0 %1786 }
 0x4f8   : > { %4001 = vpow2.f32 %v1458_v22 }
 0x500   : > { %v4627_v23 = vpop.f32.mrb[4].mxu0 }
 0x501   : > { %v3692_v24 = vpop.f32.mrb[5].mxu0 }
 0x502   : > { %v4002_v26 = vpop.eup %4001 }
 0x503   : > { %v1463_v27 = vsel %vm967_vm3, %v4002_v26, 0.0 }
 0x504   : > { %v1364_v29 = vpop.f32.mrb[6].mxu0  ;;  %1464 = vadd.xlane.f32.xlu1 %v1463_v27 }
 0x505   : > { %v3702_v32 = vpop.f32.mrb[7].mxu0  ;;  %v1446_v33 = vmul.f32 0.35355338, %v1364_v29 }
 0x507   : > { %v1448_v34 = vsel %vm967_vm3, %v1446_v33, -inf }
 0x515   : > { %1864 = vrot.lane.b32.xlu1 %v4552_v30, %s4203_s2 }
 0x539   : > { %1449 = vmax.xlane.f32.xlu1 %v1448_v34 }
 0x54a   : > { %1471 = vrot.lane.b32.xlu1 %v4588_v56, %s4202_s1 }
 0x591   : > { %v1465_v37 = vpop.xlane.xlu1 %1464 }
 0x592   : > { %4003 = vrcp.f32 %v1465_v37 }
 0x595   : > { %v1865_v41 = vpop.permute.xlu1 %1864 }
 0x59c   : > { %v4004_v38 = vpop.eup %4003 }
 0x59d   : > { %v1469_v39 = vmul.f32 %v4004_v38, %v4002_v26 }
 0x59f   : > { %3716 = vmatmul.mubr.msk.f32.vlgmr.msra.gmra.mrb[10].mxu1 %vm967_vm3, %v1469_v39 }
 0x5a0   : > { %3729 = vmatpush3.xpose.msk.msra.mxu1 %vm967_vm3, %v1789_v35  ;;  %3730 = vmatprep.mubr.msk.f32.mxu1 %vm4201_vm2, %v4200_v16 }
 0x5a1   : > { %3733 = vmatprep.subr.mxu1 %v4200_v16 }
 0x5a3   : > { %3731 = vmatmul.mubr.msk.f32.vlgmr.msra.gmra.mrb[12].mxu1 %vm967_vm3, %v1787_v40 }
 0x5a4   : > { %3734 = vmatpush3.xpose.msk.msra.mxu1 %vm967_vm3, %v1867_v36  ;;  %3735 = vmatprep.mubr.msk.f32.mxu1 %vm4201_vm2, %v4200_v16 }
 0x5a5   : > { %3743 = vmatprep.subr.mxu1 %v4200_v16 }
 0x5a7   : > { %3736 = vmatmul.mubr.msk.f32.vlgmr.msra.gmra.mrb[14].mxu1 %vm967_vm3, %v1865_v41 }
 0x5a8   : > { %3745 = vmatprep.mubr.msk.f32.mxu1 %vm4201_vm2, %v4200_v16 }
 0x5c6   : > { %v1450_v42 = vpop.xlane.xlu1 %1449 }
 0x5c7   : > { %v1454_v43 = vsub.f32 %v1446_v33, %v1450_v42 }
 0x5c9   : > { %v1456_v44 = vmul.f32 1.442695, %v1454_v43 }
 0x5ca   : > { %v1472_v45 = vpop.permute.xlu1 %1471 }
 0x5cb   : > { %4005 = vpow2.f32 %v1456_v44  ;;  %3709 = vmatpush3.msra.mxu0 %v1472_v45 }
 0x5cc   : > { %3718 = vmatprep.subr.mxu0 %v964_v63 }
 0x5d5   : > { %v4006_v46 = vpop.eup %4005 }
 0x5d6   : > { %v1460_v47 = vsel %vm967_vm3, %v4006_v46, 0.0 }
 0x5d7   : > { %1461 = vadd.xlane.f32.xlu0 %v1460_v47 }
 0x664   : > { %v1462_v48 = vpop.xlane.xlu0 %1461 }
 0x665   : > { %4007 = vrcp.f32 %v1462_v48 }
 0x66f   : > { %v4008_v49 = vpop.eup %4007 }
 0x670   : > { %v1468_v50 = vmul.f32 %v4008_v49, %v4006_v46 }
 0x672   : > { %3711 = vmatmul.mubr.msk.f32.vlgmr.msra.gmra.mrb[8].mxu0 %vm967_vm3, %v1468_v50  ;;  %v1620_v51 = vpop.f32.mrb[10].mxu1 }
 0x673   : > { %v3717_v52 = vpop.f32.mrb[11].mxu1  ;;  %3719 = vmatpush3.msra.mxu0 %v964_v63 }
 0x674   : > { %3723 = vmatprep.subr.mxu0 %v963_v0 }
 0x676   : > { %v1860_v53 = vpop.f32.mrb[12].mxu1 }
 0x677   : > { %v1942_v55 = vmul.f32 0.35355338, %v1860_v53  ;;  %v3732_v57 = vpop.f32.mrb[13].mxu1 }
 0x679   : > { %v1944_v58 = vsel %vm967_vm3, %v1942_v55, -inf }
 0x67a   : > { %1945 = vmax.xlane.f32.xlu0 %v1944_v58  ;;  %v1938_v59 = vpop.f32.mrb[14].mxu1 }
 0x67b   : > { %v1943_v60 = vmul.f32 0.35355338, %v1938_v59  ;;  %v3737_v61 = vpop.f32.mrb[15].mxu1 }
 0x67c   : > { %v966_v61 = vld [vmem:[%s4485_s0 + $0x18] sm:$0xff] }
 0x67d   : > { %v1947_v62 = vsel %vm967_vm3, %v1943_v60, -inf }
 0x67e   : > { %1948 = vmax.xlane.f32.xlu0 %v1947_v62  ;;  %v2623_v62 = vld [vmem:[%s4490_s29 + $0x8] sm:$0xff] }
 0x707   : > { %v1946_v1 = vpop.xlane.xlu0 %1945 }
 0x708   : > { %v1950_v2 = vsub.f32 %v1942_v55, %v1946_v1 }
 0x70a   : > { %v1952_v3 = vmul.f32 1.442695, %v1950_v2 }
 0x70b   : > { %v1949_v4 = vpop.xlane.xlu0 %1948 }
 0x70c   : > { %4009 = vpow2.f32 %v1952_v3  ;;  %v1951_v5 = vsub.f32 %v1943_v60, %v1949_v4  ;;  %v2624_v4 = vld [vmem:[%s4490_s29 + $0x10] sm:$0xff] }
 0x70e   : > { %v1954_v6 = vmul.f32 1.442695, %v1951_v5  ;;  %v2625_v5 = vld [vmem:[%s4490_s29 + $0x18] sm:$0xff] }
 0x710   : > { %4011 = vpow2.f32 %v1954_v6  ;;  %v3872_v6 = vpack.c.bf16 %v2625_v5, %v2624_v4  ;;  %v2937_v4 = vld [vmem:[%s4500_s15 + $0x20] sm:$0xff]  ;;  %v2938_v5 = vld [vmem:[%s4500_s15 + $0x28] sm:$0xff] }
 0x716   : > { %v4010_v7 = vpop.eup %4009 }
 0x717   : > { %v1956_v8 = vsel %vm967_vm3, %v4010_v7, 0.0 }
 0x718   : > { %1957 = vadd.xlane.f32.xlu0 %v1956_v8 }
 0x71a   : > { %v4012_v10 = vpop.eup %4011 }
 0x71b   : > { %v1959_v11 = vsel %vm967_vm3, %v4012_v10, 0.0 }
 0x71c   : > { %1960 = vadd.xlane.f32.xlu1 %v1959_v11  ;;  %v2618_v11 = vsub.s32 3, %v4537_v18 }
 0x72d   : > { %2201 = vrot.lane.b32.xlu1 %v4554_v31, %s4204_s3 }
 0x72e   : > { %1966 = vrot.lane.b32.xlu0 %v4588_v56, %s4203_s2 }
 0x732   : > { %2042 = vrot.lane.b32.xlu0 %v4586_v54, %s4203_s2 }
 0x736   : > { %2203 = vrot.lane.b32.xlu0 %v4548_v28, %s4204_s3  ;;  %v965_v28 = vld [vmem:[%s4485_s0 + $0x10] sm:$0xff]  ;;  %s4880_s0 = scalar_lea.vmem [#allocation6], %s4458_s24  ;;  %s4205_s24 = smov [#allocation9]  }
 0x737   : > { %s4881_s4 = smov %s4880_s0  ;;  %s3245_s17 = sshll.u32 %s4205_s24, 4  ;;  %s3246_s17 = int_to_ptr.vmem [resolvable:$true] %s3245_s17 }
 0x738   : > { %v2708_v8 = vld [vmem:[%s4881_s4 + $0x8] sm:$0xff]  ;;  %s4125_s18 = scalar_lea.vmem %s3246_s17, 256  ;;  %p4132_p9 = scmp.lt.s32.totalorder %s3246_s17, %s3246_s17 }
 0x739   : > { %p4126_p6 = scmp.ne.s32.totalorder %s3246_s17, %s4125_s18  ;;  %p4133_p13 = scmp.lt.s32.totalorder %s4125_s18, %s4125_s18 }
 0x73a   : > { %2281 = vrot.lane.b32.xlu0 %v4546_v25, %s4204_s3 }
 0x73b   : > { %p4127_p8 = pnand %p4126_p6, %p3948_p0  ;;  %p4134_p7 = por %p4133_p13, %p4132_p9 }
 0x73d   : > { %p4128_p11 = pneg %p4127_p8 }
 0x73e   : > { %2279 = vrot.lane.b32.xlu0 %v4552_v30, %s4204_s3 }
 0x73f   : > { %p4135_p12 = pnand %p4134_p7, %p4128_p11 }
 0x745   : > { %v1543_v12 = vpop.f32.mrb[8].mxu0 }
 0x746   : > { %v3712_v14 = vpop.f32.mrb[9].mxu0  ;;  %3720 = vmatprep.mubr.msk.f32.mxu0 %vm967_vm3, %v1543_v12  ;;  %v2619_v12 = vrot.slane %v4541_v20, %v2618_v11  ;;  %v3027_v11 = vld [vmem:[%s4505_s16] sm:$0xff] }
 0x747   : > { %3721 = vmatmul.mubr.msk.f32.vlgmr.msra.gmra.mrb[10].mxu0 %vm967_vm3, %v1620_v51 }
 0x748   : > { %3725 = vmatprep.mubr.msk.f32.mxu0 %vm967_vm3, %v4627_v23  ;;  %3724 = vmatpush3.msra.mxu0 %v963_v0 }
 0x749   : > { %3738 = vmatprep.subr.mxu0 %v4200_v16 }
 0x74f   : > { %3726 = vmatmul.mubr.msk.f32.vlgmr.msra.gmra.mrb[10].mxu0 %vm967_vm3, %v4622_v9 }
 0x750   : > { %3740 = vmatprep.mubr.msk.f32.mxu0 %vm4201_vm2, %v4200_v16 }
 0x7a5   : > { %v1958_v25 = vpop.xlane.xlu0 %1957 }
 0x7a6   : > { %4013 = vrcp.f32 %v1958_v25 }
 0x7a9   : > { %v1961_v30 = vpop.xlane.xlu1 %1960  ;;  %v1967_v31 = vpop.permute.xlu0 %1966 }
 0x7aa   : > { %4015 = vrcp.f32 %v1961_v30  ;;  %3739 = vmatpush3.msra.mxu0 %v1967_v31 }
 0x7ab   : > { %3748 = vmatprep.subr.mxu0 %v965_v28 }
 0x7ad   : > { %v2043_v17 = vpop.permute.xlu0 %2042  ;;  %v2202_v24 = vpop.permute.xlu1 %2201 }
 0x7ae   : > { %3744 = vmatpush3.msra.mxu1 %v2043_v17 }
 0x7af   : > { %3753 = vmatprep.subr.mxu1 %v4200_v16 }
 0x7b0   : > { %v4014_v19 = vpop.eup %4013 }
 0x7b1   : > { %v1964_v21 = vmul.f32 %v4014_v19, %v4010_v7  ;;  %v2204_v23 = vpop.permute.xlu0 %2203  ;;  %v2707_v7 = vld [vmem:[%s4880_s0] sm:$0xff] }
 0x7b3   : > { %3741 = vmatmul.mubr.msk.f32.vlgmr.msra.gmra.mrb[12].mxu0 %vm967_vm3, %v1964_v21 }
 0x7b4   : > { %v4016_v9 = vpop.eup %4015  ;;  %3749 = vmatpush3.msra.mxu0 %v965_v28 }
 0x7b5   : > { %v1965_v22 = vmul.f32 %v4016_v9, %v4012_v10  ;;  %3758 = vmatprep.subr.mxu0 %v4200_v16  ;;  %v2282_v29 = vpop.permute.xlu0 %2281  ;;  %v3876_v10 = vpack.c.bf16 %v2708_v8, %v2707_v7  ;;  %v2939_v7 = vld [vmem:[%s4500_s15 + $0x30] sm:$0xff]  ;;  %v2940_v8 = vld [vmem:[%s4500_s15 + $0x38] sm:$0xff] }
 0x7b7   : > { %3746 = vmatmul.mubr.msk.f32.vlgmr.msra.gmra.mrb[16].mxu1 %vm967_vm3, %v1965_v22 }
 0x7b8   : > { %3754 = vmatpush3.xpose.msk.msra.mxu1 %vm967_vm3, %v2204_v23  ;;  %3755 = vmatprep.mubr.msk.f32.mxu1 %vm4201_vm2, %v4200_v16 }
 0x7b9   : > { %3763 = vmatprep.subr.mxu1 %v4200_v16  ;;  %v2280_v34 = vpop.permute.xlu0 %2279 }
 0x7bb   : > { %3756 = vmatmul.mubr.msk.f32.vlgmr.msra.gmra.mrb[18].mxu1 %vm967_vm3, %v2202_v24 }
 0x7bc   : > { %3765 = vmatprep.mubr.msk.f32.mxu1 %vm4201_vm2, %v4200_v16 }
 0x886   : > { %v2038_v26 = vpop.f32.mrb[12].mxu0 }
 0x887   : > { %v3742_v27 = vpop.f32.mrb[13].mxu0  ;;  %3750 = vmatprep.mubr.msk.f32.mxu0 %vm967_vm3, %v2038_v26 }
 0x88a   : > { %v2114_v32 = vpop.f32.mrb[16].mxu1 }
 0x88b   : > { %v3747_v33 = vpop.f32.mrb[17].mxu1  ;;  %3751 = vmatmul.mubr.msk.f32.vlgmr.msra.gmra.mrb[10].mxu0 %vm967_vm3, %v2114_v32 }
 0x88c   : > { %3759 = vmatpush3.xpose.msk.msra.mxu0 %vm967_vm3, %v2282_v29  ;;  %3760 = vmatprep.mubr.msk.f32.mxu0 %vm4201_vm2, %v4200_v16 }
 0x88d   : > { %3768 = vmatprep.subr.mxu0 %v4200_v16 }
 0x88e   : > { %v2275_v35 = vpop.f32.mrb[18].mxu1 }
 0x88f   : > { %v2357_v36 = vmul.f32 0.35355338, %v2275_v35  ;;  %v3757_v37 = vpop.f32.mrb[19].mxu1  ;;  %3761 = vmatmul.mubr.msk.f32.vlgmr.msra.gmra.mrb[14].mxu0 %vm967_vm3, %v2280_v34 }
 0x890   : > { %3770 = vmatprep.mubr.msk.f32.mxu0 %vm4201_vm2, %v4200_v16 }
 0x891   : > { %v2359_v38 = vsel %vm967_vm3, %v2357_v36, -inf }
 0x892   : > { %2360 = vmax.xlane.f32.xlu0 %v2359_v38 }
 0x91f   : > { %v2361_v39 = vpop.xlane.xlu0 %2360 }
 0x920   : > { %v2365_v40 = vsub.f32 %v2357_v36, %v2361_v39  ;;  %v2832_v39 = vld [vmem:[%s4495_s21] sm:$0xff] }
 0x922   : > { %v2367_v41 = vmul.f32 1.442695, %v2365_v40  ;;  %v2833_v40 = vld [vmem:[%s4495_s21 + $0x8] sm:$0xff] }
 0x924   : > { %4017 = vpow2.f32 %v2367_v41  ;;  %v3880_v41 = vpack.c.bf16 %v2833_v40, %v2832_v39 }
 0x92e   : > { %v4018_v42 = vpop.eup %4017 }
 0x92f   : > { %v2371_v43 = vsel %vm967_vm3, %v4018_v42, 0.0 }
 0x930   : > { %2372 = vadd.xlane.f32.xlu0 %v2371_v43  ;;  %v2835_v43 = vld [vmem:[%s4495_s21 + $0x18] sm:$0xff] }
 0x962   : > { %v2353_v44 = vpop.f32.mrb[14].mxu0 }
 0x963   : > { %v2358_v45 = vmul.f32 0.35355338, %v2353_v44  ;;  %v3762_v46 = vpop.f32.mrb[15].mxu0 }
 0x965   : > { %v2362_v47 = vsel %vm967_vm3, %v2358_v45, -inf }
 0x966   : > { %2363 = vmax.xlane.f32.xlu1 %v2362_v47 }
 0x977   : > { %2457 = vrot.lane.b32.xlu1 %v4586_v54, %s4204_s3 }
 0x9bd   : > { %v2373_v53 = vpop.xlane.xlu0 %2372 }
 0x9f3   : > { %v2364_v16 = vpop.xlane.xlu1 %2363 }
 0x9f4   : > { %v2366_v48 = vsub.f32 %v2358_v45, %v2364_v16 }
 0x9f6   : > { %v2369_v49 = vmul.f32 1.442695, %v2366_v48 }
 0x9f7   : > { %v2458_v50 = vpop.permute.xlu1 %2457 }
 0x9f8   : > { %4019 = vpow2.f32 %v2369_v49  ;;  %3769 = vmatpush3.msra.mxu0 %v2458_v50  ;;  %v2822_v50 = vsub.s32 4, %v4537_v18 }
 0x9f9   : > { %4021 = vrcp.f32 %v2373_v53  ;;  %3773 = vmatprep.subr.mxu0 %v966_v61 }
 0xa02   : > { %v4020_v51 = vpop.eup %4019 }
 0xa03   : > { %v2374_v52 = vsel %vm967_vm3, %v4020_v51, 0.0  ;;  %v4022_v54 = vpop.eup %4021 }
 0xa04   : > { %2375 = vadd.xlane.f32.xlu0 %v2374_v52  ;;  %v2379_v57 = vmul.f32 %v4022_v54, %v4018_v42  ;;  %v2834_v42 = vld [vmem:[%s4495_s21 + $0x10] sm:$0xff]  ;;  %v2823_v52 = vrot.slane %v4541_v20, %v2822_v50 }
 0xa05   : > { %v3884_v44 = vpack.c.bf16 %v2835_v43, %v2834_v42 }
 0xa1a   : > { %2381 = vrot.lane.b32.xlu0 %v4588_v56, %s4204_s3  ;;  %v2622_v56 = vld [vmem:[%s4490_s29] sm:$0xff] }
 0xa1b   : > { %v3868_v63 = vpack.c.bf16 %v2623_v62, %v2622_v56  ;;  %v2933_v62 = vld [vmem:[%s4500_s15] sm:$0xff] }
 0xa91   : > { %v2376_v55 = vpop.xlane.xlu0 %2375 }
 0xa92   : > { %4023 = vrcp.f32 %v2376_v55 }
 0xa95   : > { %v2382_v58 = vpop.permute.xlu0 %2381 }
 0xa96   : > { %3764 = vmatpush3.msra.mxu1 %v2382_v58 }
 0xa97   : > { %3766 = vmatmul.mubr.msk.f32.vlgmr.msra.gmra.mrb[20].mxu1 %vm967_vm3, %v2379_v57  ;;  %3869 = vmatprep.subr.bf16.mxu1 %v3868_v63 }
 0xa98   : > { %3871 = vmatpush3.bf16.msra.mxu1 %v3868_v63  ;;  %v2934_v63 = vld [vmem:[%s4500_s15 + $0x8] sm:$0xff] }
 0xa99   : > { %3873 = vmatprep.subr.bf16.mxu1 %v3872_v6 }
 0xa9c   : > { %v4024_v59 = vpop.eup %4023  ;;  %3875 = vmatpush3.bf16.msra.mxu1 %v3872_v6  ;;  %v3896_v6 = vpack.c.bf16 %v2938_v5, %v2937_v4  ;;  %v3225_v4 = vsub.s32 7, %v4537_v18 }
 0xa9d   : > { %v2380_v60 = vmul.f32 %v4024_v59, %v4020_v51  ;;  %3881 = vmatprep.subr.bf16.mxu1 %v3880_v41  ;;  %v2828_v51 = vsub.s32 5, %v4537_v18 }
 0xa9e   : > { %v3226_v5 = vrot.slane %v4541_v20, %v3225_v4 }
 0xa9f   : > { %3771 = vmatmul.mubr.msk.f32.vlgmr.msra.gmra.mrb[16].mxu0 %vm967_vm3, %v2380_v60  ;;  %v2829_v54 = vrot.slane %v4541_v20, %v2828_v51 }
 0xaa0   : > { %3774 = vmatpush3.msra.mxu0 %v966_v61 }
 0xaa1   : > { %3877 = vmatprep.subr.bf16.mxu0 %v3876_v10 }
 0xb6a   : > { %v2453_v0 = vpop.f32.mrb[20].mxu1 }
 0xb6b   : > { %v3767_v1 = vpop.f32.mrb[21].mxu1  ;;  %3775 = vmatprep.mubr.msk.f32.mxu0 %vm967_vm3, %v2453_v0  ;;  %v3888_v0 = vpack.c.bf16 %v2934_v63, %v2933_v62 }
 0xb6c   : > { %v2935_v1 = vld [vmem:[%s4500_s15 + $0x10] sm:$0xff] }
 0xb72   : > { %v2529_v2 = vpop.f32.mrb[16].mxu0 }
 0xb73   : > { %v3772_v3 = vpop.f32.mrb[17].mxu0  ;;  %3776 = vmatmul.mubr.msk.f32.vlgmr.msra.gmra.mrb[10].mxu0 %vm967_vm3, %v2529_v2  ;;  %v2936_v2 = vld [vmem:[%s4500_s15 + $0x18] sm:$0xff] }
 0xb74   : > { %3879 = vmatpush3.bf16.msra.mxu0 %v3876_v10  ;;  %v3892_v3 = vpack.c.bf16 %v2936_v2, %v2935_v1  ;;  %v3900_v10 = vpack.c.bf16 %v2940_v8, %v2939_v7 }
 0xb75   : > { %3889 = vmatprep.subr.bf16.mxu0 %v3888_v0 }
 0xc46   : > { %v3777_v14 = vpop.f32.mrb[10].mxu0 }
 0xc47   : > { %v2605_v25 = vpop.f32.mrb[11].mxu0  ;;  %v2621_v30 = vadd.f32 %v3777_v14, %v2619_v12 }
 0xc48   : > { %v2620_v28 = vadd.f32 %v2619_v12, %v2605_v25  ;;  %v3028_v12 = vld [vmem:[%s4505_s16 + $0x8] sm:$0xff]  ;;  %v3522_v25 = vld [vmem:[%s692_s26] ss:$0 sm:$0xff] }
 0xc49   : > { %v3904_v14 = vpack.c.bf16 %v3028_v12, %v3027_v11  ;;  %v3531_v11 = vld [vmem:[%s4515_s28 + $0x8] ss:$0 sm:$0xff] }
 0xc4a   : > { %3786 = vmatprep.mubr.msk.f32.mxu1 %vm715_vm1, %v2620_v28 }
 0xc4b   : > { %3787 = vmatmul.mubr.msk.f32.vlgmr.msra.gmra.mrb[22].mxu1 %vm715_vm1, %v2621_v30 }
 0xc4c   : > { %3883 = vmatpush3.bf16.msra.mxu1 %v3880_v41 }
 0xc4d   : > { %3885 = vmatprep.subr.bf16.mxu1 %v3884_v44 }
 0xc50   : > { %3887 = vmatpush3.bf16.msra.mxu1 %v3884_v44 }
 0xc51   : > { %3905 = vmatprep.subr.bf16.mxu1 %v3904_v14 }
 0xd1e   : > { %v3788_v31 = vpop.f32.mrb[22].mxu1 }
 0xd1f   : > { %v2698_v17 = vpop.f32.mrb[23].mxu1 }
 0xd20   : > { %3793 = vmatprep.mubr.msk.f32.mxu0 %vm2709_vm4, %v2698_v17 }
 0xd21   : > { %3794 = vmatmul.mubr.msk.f32.vlgmr.msra.gmra.mrb[18].mxu0 %vm2709_vm4, %v3788_v31 }
 0xd22   : > { %3891 = vmatpush3.bf16.msra.mxu0 %v3888_v0 }
 0xd23   : > { %3893 = vmatprep.subr.bf16.mxu0 %v3892_v3 }
 0xd26   : > { %3895 = vmatpush3.bf16.msra.mxu0 %v3892_v3 }
 0xd27   : > { %3897 = vmatprep.subr.bf16.mxu0 %v3896_v6 }
 0xd2a   : > { %3899 = vmatpush3.bf16.msra.mxu0 %v3896_v6 }
 0xd2b   : > { %3901 = vmatprep.subr.bf16.mxu0 %v3900_v10 }
 0xd2e   : > { %3903 = vmatpush3.bf16.msra.mxu0 %v3900_v10 }
 0xdf4   : > { %v3795_v19 = vpop.f32.mrb[18].mxu0 }
 0xdf5   : > { %v2788_v21 = vadd.f32 %v3795_v19, %v2621_v30  ;;  %v2782_v9 = vpop.f32.mrb[19].mxu0 }
 0xdf6   : > { %v2783_v22 = vadd.f32 %v2782_v9, %v2620_v28 }
 0xdf7   : > { %v2792_v23 = vadd.f32 %v2788_v21, %v4526_v15 }
 0xdf8   : > { %v2791_v24 = vadd.f32 %v2783_v22, %v4520_v13 }
 0xdf9   : > { %v2796_v26 = vsel %vm715_vm1, %v2792_v23, 0.0 }
 0xdfa   : > { %2797 = vadd.xlane.f32.xlu1 %v2796_v26  ;;  %v2793_v27 = vsel %vm715_vm1, %v2791_v24, 0.0 }
 0xdfb   : > { %2794 = vadd.xlane.f32.xlu0 %v2793_v27 }
 0xe87   : > { %v2798_v29 = vpop.xlane.xlu1 %2797 }
 0xe88   : > { %v2801_v32 = vmul.f32 0.03125, %v2798_v29  ;;  %v2795_v33 = vpop.xlane.xlu0 %2794 }
 0xe89   : > { %v2800_v34 = vmul.f32 0.03125, %v2795_v33  ;;  %v3029_v33 = vld [vmem:[%s4505_s16 + $0x10] sm:$0xff] }
 0xe8a   : > { %v2803_v35 = vsub.f32 %v2792_v23, %v2801_v32 }
 0xe8b   : > { %v2802_v36 = vsub.f32 %v2791_v24, %v2800_v34  ;;  %v3030_v34 = vld [vmem:[%s4505_s16 + $0x18] sm:$0xff] }
 0xe8c   : > { %v2805_v13 = vmul.f32 %v2803_v35, %v2803_v35 }
 0xe8d   : > { %v2804_v37 = vmul.f32 %v2802_v36, %v2802_v36 }
 0xe8e   : > { %v2809_v38 = vsel %vm715_vm1, %v2805_v13, 0.0  ;;  %v2943_v13 = vsub.s32 6, %v4537_v18 }
 0xe8f   : > { %v2806_v15 = vsel %vm715_vm1, %v2804_v37, 0.0  ;;  %v3113_v37 = vld [vmem:[%s554_s6 + $0x8] sm:$0xff] }
 0xe90   : > { %2807 = vadd.xlane.f32.xlu0 %v2806_v15 }
 0xe94   : > { %2810 = vadd.xlane.f32.xlu0 %v2809_v38  ;;  %v2944_v38 = vrot.slane %v4541_v20, %v2943_v13 }
 0xf1d   : > { %v2808_v45 = vpop.xlane.xlu0 %2807 }
 0xf1e   : > { %v2812_v46 = vmul.f32 0.03125, %v2808_v45 }
 0xf20   : > { %v2814_v47 = vadd.f32 1e-12, %v2812_v46 }
 0xf21   : > { %v2811_v16 = vpop.xlane.xlu0 %2810 }
 0xf22   : > { %4025 = vrsqrt.f32 %v2814_v47  ;;  %v2813_v48 = vmul.f32 0.03125, %v2811_v16 }
 0xf24   : > { %v2815_v49 = vadd.f32 1e-12, %v2813_v48 }
 0xf26   : > { %4027 = vrsqrt.f32 %v2815_v49 }
 0xf2c   : > { %v4026_v53 = vpop.eup %4025 }
 0xf2d   : > { %v2818_v55 = vmul.f32 %v4026_v53, %v2802_v36  ;;  %v3112_v36 = vld [vmem:[%s554_s6] sm:$0xff] }
 0xf2e   : > { %v3912_v15 = vpack.c.bf16 %v3113_v37, %v3112_v36 }
 0xf2f   : > { %v2824_v57 = vmul.f32 %v2823_v52, %v2818_v55 }
 0xf30   : > { %v4028_v58 = vpop.eup %4027 }
 0xf31   : > { %v2819_v59 = vmul.f32 %v4028_v58, %v2803_v35  ;;  %v4739_v60 = vadd.f32 %v2829_v54, %v2824_v57  ;;  %v3908_v35 = vpack.c.bf16 %v3030_v34, %v3029_v33 }
 0xf33   : > { %v2825_v61 = vmul.f32 %v2823_v52, %v2819_v59  ;;  %3804 = vmatprep.mubr.msk.f32.mxu1 %vm715_vm1, %v4739_v60 }
 0xf35   : > { %v4743_v56 = vadd.f32 %v2829_v54, %v2825_v61 }
 0xf37   : > { %3805 = vmatmul.mubr.msk.f32.vlgmr.msra.gmra.mrb[24].mxu1 %vm715_vm1, %v4743_v56 }
 0xf38   : > { %3907 = vmatpush3.bf16.msra.mxu1 %v3904_v14 }
 0xf39   : > { %3909 = vmatprep.subr.bf16.mxu1 %v3908_v35 }
 0xf3c   : > { %3911 = vmatpush3.bf16.msra.mxu1 %v3908_v35 }
 0xf3d   : > { %3913 = vmatprep.subr.bf16.mxu1 %v3912_v15 }
0x100a   : > { %v3806_v28 = vpop.f32.mrb[24].mxu1 }
0x100b   : > { %v2920_v30 = vadd.f32 %v3806_v28, %v3522_v25  ;;  %v2914_v31 = vpop.f32.mrb[25].mxu1 }
0x100c   : > { %v2915_v17 = vadd.f32 %v3522_v25, %v2914_v31 }
0x100d   : > { %v2926_v19 = vmul.f32 0.70710677, %v2920_v30  ;;  %v2924_v27 = vmul.f32 0.5, %v2920_v30 }
0x100e   : > { %v2925_v21 = vmul.f32 0.70710677, %v2915_v17  ;;  %v2923_v24 = vmul.f32 0.5, %v2915_v17 }
0x100f   : > { %4029 = verf.f32 %v2926_v19 }
0x1010   : > { %4031 = verf.f32 %v2925_v21 }
0x1019   : > { %v4030_v9 = vpop.eup %4029 }
0x101a   : > { %v4032_v22 = vpop.eup %4031  ;;  %v2930_v23 = vadd.f32 1.0, %v4030_v9 }
0x101b   : > { %v2929_v26 = vadd.f32 1.0, %v4032_v22 }
0x101c   : > { %v2932_v32 = vmul.f32 %v2930_v23, %v2924_v27 }
0x101d   : > { %v2931_v29 = vmul.f32 %v2929_v26, %v2923_v24 }
0x101f   : > { %3823 = vmatprep.mubr.msk.f32.mxu0 %vm2945_vm5, %v2931_v29 }
0x1020   : > { %3824 = vmatmul.mubr.msk.f32.vlgmr.msra.gmra.mrb[20].mxu0 %vm2945_vm5, %v2932_v32 }
0x10f3   : > { %v3825_v39 = vpop.f32.mrb[20].mxu0 }
0x10f4   : > { %v3018_v40 = vpop.f32.mrb[21].mxu0  ;;  %v3024_v42 = vadd.f32 %v3825_v39, %v2944_v38 }
0x10f5   : > { %v3019_v41 = vadd.f32 %v3018_v40, %v2944_v38 }
0x10f7   : > { %3834 = vmatprep.mubr.msk.f32.mxu1 %vm715_vm1, %v3019_v41 }
0x10f8   : > { %3835 = vmatmul.mubr.msk.f32.vlgmr.msra.gmra.mrb[26].mxu1 %vm715_vm1, %v3024_v42 }
0x10f9   : > { %3915 = vmatpush3.bf16.msra.mxu1 %v3912_v15 }
0x11cb   : > { %v3836_v43 = vpop.f32.mrb[26].mxu1 }
0x11cc   : > { %v3103_v44 = vpop.f32.mrb[27].mxu1 }
0x11cd   : > { %3841 = vmatprep.mubr.msk.f32.mxu1 %vm2709_vm4, %v3103_v44 }
0x11ce   : > { %3842 = vmatmul.mubr.msk.f32.vlgmr.msra.gmra.mrb[28].mxu1 %vm2709_vm4, %v3836_v43 }
0x12a1   : > { %v3843_v45 = vpop.f32.mrb[28].mxu1 }
0x12a2   : > { %v3192_v46 = vadd.f32 %v3843_v45, %v3024_v42  ;;  %v3186_v47 = vpop.f32.mrb[29].mxu1 }
0x12a3   : > { %v3187_v16 = vadd.f32 %v3186_v47, %v3019_v41 }
0x12a4   : > { %v3196_v48 = vadd.f32 %v3192_v46, %v4743_v56 }
0x12a5   : > { %v3195_v49 = vadd.f32 %v3187_v16, %v4739_v60 }
0x12a6   : > { %v3200_v50 = vsel %vm715_vm1, %v3196_v48, 0.0 }
0x12a7   : > { %3201 = vadd.xlane.f32.xlu1 %v3200_v50  ;;  %v3197_v51 = vsel %vm715_vm1, %v3195_v49, 0.0 }
0x12a8   : > { %3198 = vadd.xlane.f32.xlu0 %v3197_v51 }
0x1334   : > { %v3202_v52 = vpop.xlane.xlu1 %3201 }
0x1335   : > { %v3204_v53 = vmul.f32 0.03125, %v3202_v52  ;;  %v3199_v55 = vpop.xlane.xlu0 %3198 }
0x1336   : > { %v3203_v54 = vmul.f32 0.03125, %v3199_v55 }
0x1337   : > { %v3206_v57 = vsub.f32 %v3196_v48, %v3204_v53 }
0x1338   : > { %v3205_v58 = vsub.f32 %v3195_v49, %v3203_v54 }
0x1339   : > { %v3208_v59 = vmul.f32 %v3206_v57, %v3206_v57 }
0x133a   : > { %v3207_v61 = vmul.f32 %v3205_v58, %v3205_v58 }
0x133b   : > { %v3212_v62 = vsel %vm715_vm1, %v3208_v59, 0.0 }
0x133c   : > { %3213 = vadd.xlane.f32.xlu1 %v3212_v62  ;;  %v3209_v56 = vsel %vm715_vm1, %v3207_v61, 0.0 }
0x133d   : > { %3210 = vadd.xlane.f32.xlu0 %v3209_v56 }
0x13c9   : > { %v3214_v60 = vpop.xlane.xlu1 %3213 }
0x13ca   : > { %v3216_v63 = vmul.f32 0.03125, %v3214_v60  ;;  %v3211_v0 = vpop.xlane.xlu0 %3210 }
0x13cb   : > { %v3215_v1 = vmul.f32 0.03125, %v3211_v0 }
0x13cc   : > { %v3218_v2 = vadd.f32 1e-12, %v3216_v63 }
0x13cd   : > { %v3217_v3 = vadd.f32 1e-12, %v3215_v1 }
0x13ce   : > { %4033 = vrsqrt.f32 %v3218_v2 }
0x13cf   : > { %4035 = vrsqrt.f32 %v3217_v3 }
0x13d8   : > { %v4034_v6 = vpop.eup %4033 }
0x13d9   : > { %v4036_v7 = vpop.eup %4035  ;;  %v3222_v8 = vmul.f32 %v4034_v6, %v3206_v57 }
0x13da   : > { %v3221_v10 = vmul.f32 %v4036_v7, %v3205_v58 }
0x13db   : > { %v3228_v12 = vmul.f32 %v3226_v5, %v3222_v8 }
0x13dc   : > { %v3227_v14 = vmul.f32 %v3226_v5, %v3221_v10 }
0x13dd   : > { %v3234_v25 = vadd.f32 %v3531_v11, %v3228_v12 }
0x13de   : > { %v3233_v28 = vadd.f32 %v3531_v11, %v3227_v14 }
0x13df   : > { %3236 = vst.msk [vmem:[#allocation2 + $0x8] sm:$0xff] %vm715_vm1, %v3234_v25  ;;  %3238 = vst.msk [vmem:[#allocation9 + $0x8] sm:$0xff] %vm715_vm1, %v3234_v25 }
0x13e0   : > { %3235 = vst.msk [vmem:[#allocation2] sm:$0xff] %vm715_vm1, %v3233_v28  ;;  %3237 = vst.msk [vmem:[#allocation9] sm:$0xff] %vm715_vm1, %v3233_v28 }
0x13e1   : > { %4138 = shalt.err (!%p4135_p12)
}
0x13e2   : > { %s4139_s22 = scalar_lea.hbm %s4836_s13, 256 }
0x13e3   : > { %p4140_p2 = scmp.ne.s32.totalorder %s4836_s13, %s4139_s22  ;;  %p4145_p3 = scmp.lt.u32.totalorder %s4139_s22, %s4836_s13 }
0x13e5   : > { %p4141_p4 = pnand %p4140_p2, %p3948_p0 }
0x13e7   : > { %p4142_p5 = pneg %p4141_p4 }
0x13e9   : > { %p4147_p1 = pnand %p4145_p3, %p4142_p5 }
0x13eb   : > { %4150 = shalt.err (!%p4147_p1)
}
0x13ec   : > { %s4206_s20 = smov 128   ;;  %s4207_s16 = smov 8  }
0x13ed   : > { %3931 = dma.vmem_to_hbm [thread:$0]  (%p3948_p0), %s3246_s17, 256, %s4836_s13, [#allocation5], %s4206_s20, %s4206_s20, %s4207_s16  }
0x13ee   : > { %4176 = dma.done.wait (%p3948_p0), [#allocation5], 256  }
0x13ef   : > { %4178 = vsyncadd (%p3948_p0), [#allocation5], 4294967040 }
0x13f0 PF: > { %s4882_s28 = sld [smem:[#allocation15_spill]]  ;;  %s4883_s25 = sld [smem:[#allocation13_spill]] }
0x13f1   : > { %s4884_s26 = sld [smem:[#allocation14_spill]]  ;;  %s4885_s27 = sld [smem:[#allocation16_spill]] }
0x13f6   : > { %p25_p10 = scmp.ge.s32.totalorder %s4882_s28, 4  }
0x13f8   :  { %27 = sbr.rel (!%p25_p10) target bundleno = 14 (0xe), region = 159 }
0x13ff   :  { %3261 = vsyncpa [#allocation4], 1 }
0x1400   :  { %3263 = vsyncpa [#allocation4 + $0x1], 1 }
0x1401   :  { %3264 = vsyncpa [#allocation7], 1 }
0x1402   :  { %3266 = vsyncpa [#allocation7 + $0x1], 1 }
0x1403   :  { %3267 = vsyncpa [#allocation5], 1 }
0x1404   :  { %3269 = vsyncpa [#allocation5 + $0x1], 1 }

</bundles_post_ra>
